<compile_context>
chip_gen: v6e
topology: v6e:2x2x1
jax: 0.10.0
libtpu: 0.0.40
codegen_flags: <defaults>
</compile_context>

<pallas_src>
import math

import jax
import jax.numpy as jnp
from jax.experimental import pallas as pl
from jax.experimental.pallas import tpu as pltpu

T_DIM = 16   # t_dim in the PyTorch module
HID = 256    # hidden width of the MLP trunks


def _round_up(v, m):
    return (v + m - 1) // m * m


def _mish_bf16(x):
    # mish(x) = x * tanh(softplus(x)) = x * w / (w + 2),  w = e^x (e^x + 2).
    # Clamp the exp argument: for x >= 20 the ratio is 1 to f32 precision.
    # Math stays f32 (v5e has no bf16 VPU/EUP); the result is returned in bf16
    # because every consumer is an MXU matmul with bf16 weights -- numerically
    # identical to casting at the matmul, but halves the intermediate traffic.
    e = jnp.exp(jnp.minimum(x, 20.0))
    w = e * (e + 2.0)
    return (x * w * pl.reciprocal(w + 2.0, approx=True)).astype(jnp.bfloat16)


def _linear(h, w_ref, b_ref):
    w = w_ref[...]                                    # bf16 weights
    return jnp.dot(h.astype(w.dtype), w,
                   preferred_element_type=jnp.float32) + b_ref[...]


def mlp_kernel(time_ref, x_ref,
               tw1_ref, tb1_ref, tw2_ref, tb2_ref,
               aw1_ref, ab1_ref, aw2_ref, ab2_ref, aw3_ref, ab3_ref,
               mw1_ref, mb1_ref, mw2_ref, mb2_ref, mw3_ref, mb3_ref,
               fw_ref, fb_ref,
               o_ref):
    # SinusoidalPosEmb in-kernel: emb[:, j] = cos(t * f_j + phase_j), where the
    # first half uses phase = -pi/2 (== sin) and the second half phase = 0.
    # freqs/phases are built from an iota, i.e. compile-time constants -- no
    # extra DMAs or resident input blocks.
    half = T_DIM // 2
    j = jax.lax.broadcasted_iota(jnp.int32, (1, T_DIM), 1)
    jf = jnp.where(j < half, j, j - half).astype(jnp.float32)
    freq = jnp.exp(jf * (-math.log(10000.0) / (half - 1)))
    phase = jnp.where(j < half, -math.pi / 2.0, 0.0)
    emb = jnp.cos(time_ref[...] * freq + phase)                 # (TB, 16)

    # time_mlp: Linear(16,32) -> Mish -> Linear(32,16) (padded into cols 16:32)
    t = _mish_bf16(_linear(emb, tw1_ref, tb1_ref))
    t32 = _linear(t, tw2_ref, tb2_ref)                          # (TB, 32) f32

    # mid_layer1: Linear(A,256)->Mish->Linear(256,256)->Mish->Linear(256,16)->Mish
    h = _mish_bf16(_linear(x_ref[...], aw1_ref, ab1_ref))
    h = _mish_bf16(_linear(h, aw2_ref, ab2_ref))
    h32 = _mish_bf16(_linear(h, aw3_ref, ab3_ref))              # (TB,32); cols 16:32 == 0

    # torch.cat([h, t], dim=1): complementary zero pads -> a single VPU add.
    z = h32 + t32                                               # (TB, 32)

    # mid_layer: Linear(32,256)->Mish->Linear(256,256)->Mish->Linear(256,256)->Mish
    z = _mish_bf16(_linear(z, mw1_ref, mb1_ref))
    z = _mish_bf16(_linear(z, mw2_ref, mb2_ref))
    z = _mish_bf16(_linear(z, mw3_ref, mb3_ref))

    # final_layer: Linear(256, action_dim), lane-padded to 128 output columns,
    # stored as bf16 (halves per-step HBM writeback and out-block VMEM).
    o_ref[...] = _linear(z, fw_ref, fb_ref).astype(o_ref.dtype)


def init_params(key, action_dim, t_dim=T_DIM):
    """Deterministic synthetic parameters (PyTorch-like uniform fan_in init).
    Weights are stored transposed relative to PyTorch: (in, out)."""
    layer_shapes = [
        ("tw1", (t_dim, 2 * t_dim)), ("tw2", (2 * t_dim, t_dim)),
        ("aw1", (action_dim, HID)), ("aw2", (HID, HID)), ("aw3", (HID, t_dim)),
        ("mw1", (2 * t_dim, HID)), ("mw2", (HID, HID)), ("mw3", (HID, HID)),
        ("fw", (HID, action_dim)),
    ]
    params = {}
    for name, shape in layer_shapes:
        key, kw, kb = jax.random.split(key, 3)
        bound = 1.0 / math.sqrt(shape[0])
        params[name] = jax.random.uniform(kw, shape, jnp.float32, -bound, bound)
        params[name.replace("w", "b")] = jax.random.uniform(
            kb, (1, shape[1]), jnp.float32, -bound, bound)
    return params


_PARAM_ORDER = ["tw1", "tb1", "tw2", "tb2",
                "aw1", "ab1", "aw2", "ab2", "aw3", "ab3",
                "mw1", "mb1", "mw2", "mb2", "mw3", "mb3",
                "fw", "fb"]


def prepare_params(params, *, compute_dtype=jnp.bfloat16):
    """One-time kernel-ready parameter prep: concat-eliminating zero pads,
    lane-dense final layer, bf16 weights (biases stay f32)."""
    action_dim = params["fw"].shape[1]
    out_n = _round_up(action_dim, 128)

    p = dict(params)
    # time_mlp second Linear writes into columns [16:32) of a (., 32) output.
    p["tw2"] = jnp.zeros((2 * T_DIM, 2 * T_DIM), jnp.float32).at[:, T_DIM:].set(params["tw2"])
    p["tb2"] = jnp.zeros((1, 2 * T_DIM), jnp.float32).at[:, T_DIM:].set(params["tb2"])
    # mid_layer1 last Linear writes into columns [0:16) of a (., 32) output.
    p["aw3"] = jnp.zeros((HID, 2 * T_DIM), jnp.float32).at[:, :T_DIM].set(params["aw3"])
    p["ab3"] = jnp.zeros((1, 2 * T_DIM), jnp.float32).at[:, :T_DIM].set(params["ab3"])
    # final layer padded to a lane-dense (multiple of 128) output block.
    p["fw"] = jnp.zeros((HID, out_n), jnp.float32).at[:, :action_dim].set(params["fw"])
    p["fb"] = jnp.zeros((1, out_n), jnp.float32).at[:, :action_dim].set(params["fb"])

    prepared = []
    for name in _PARAM_ORDER:
        v = p[name]
        if "w" in name:                       # weights feed the MXU in bf16
            v = v.astype(compute_dtype)
        prepared.append(v)
    return prepared


def _vmem_limit_bytes():
    """Scale the VMEM request to the chip: ~3/4 of physical, capped at 96 MiB
    (v5e/v6e: 128 MiB per core; v7x: 64 MiB per core -> ~48 MiB)."""
    cap = 64 * 1024 * 1024                # conservative fallback = v7x per-core
    try:
        info = pltpu.get_tpu_info()
        cap = int(getattr(info, "vmem_capacity_bytes", cap))
    except Exception:
        pass
    return int(min(96 * 1024 * 1024, cap * 3 // 4))


def _pick_batch_tile(batch, block_b):
    """Batch tile: multiple of 8 sublanes, capped at block_b.  If the whole
    batch would fit a single tile, split it into two even 'parallel' grid
    steps so v7x's second TensorCore is not left idle."""
    b8 = _round_up(batch, 8)
    tb = min(block_b, b8)
    if tb == b8 and b8 > 8:
        tb = _round_up((batch + 1) // 2, 8)
    return tb


def mlp_forward(x, time, kernel_params, *, block_b=2048):
    """x: (B, action_dim), time: (B,). Returns (B, action_dim) float32."""
    batch, action_dim = x.shape
    out_n = kernel_params[-1].shape[1]        # padded final-layer width (>=128)

    tb = _pick_batch_tile(batch, block_b)
    b_pad = _round_up(batch, tb)

    xf = x.astype(jnp.float32)
    tf = time.astype(jnp.float32).reshape(-1, 1)
    if b_pad != batch:
        pad = b_pad - batch
        xf = jnp.pad(xf, ((0, pad), (0, 0)))
        tf = jnp.pad(tf, ((0, pad), (0, 0)))

    grid = (b_pad // tb,)
    batch_spec = lambda feat: pl.BlockSpec((tb, feat), lambda i: (i, 0))
    # Weights/biases: constant index_map -> DMA'd once, VMEM-resident across
    # the whole grid.  (pipeline_mode=pl.Buffered(1) could shave ~0.5 MiB of
    # double-buffer VMEM for these invariant blocks on v7x; omitted since the
    # working set is already far below the limit.)
    resident = lambda arr: pl.BlockSpec(arr.shape, lambda i: (0, 0))

    in_specs = ([batch_spec(1), batch_spec(action_dim)]
                + [resident(a) for a in kernel_params])

    out = pl.pallas_call(
        mlp_kernel,
        out_shape=jax.ShapeDtypeStruct((b_pad, out_n), jnp.bfloat16),
        grid_spec=pltpu.PrefetchScalarGridSpec(
            num_scalar_prefetch=0,
            grid=grid,
            in_specs=in_specs,
            out_specs=pl.BlockSpec((tb, out_n), lambda i: (i, 0)),
        ),
        compiler_params=pltpu.CompilerParams(
            dimension_semantics=("parallel",),
            vmem_limit_bytes=_vmem_limit_bytes(),
        ),
    )(tf, xf, *kernel_params)

    return out[:batch, :action_dim].astype(jnp.float32)


def sinusoidal_pos_emb(time, dim=T_DIM):
    half = dim // 2
    scale = -math.log(10000.0) / (half - 1)
    freqs = jnp.exp(jnp.arange(half, dtype=jnp.float32) * scale)
    ang = time.astype(jnp.float32)[:, None] * freqs[None, :]
    return jnp.concatenate([jnp.sin(ang), jnp.cos(ang)], axis=-1)


def mlp_forward_ref(x, time, params):
    """Pure-JAX f32 reference matching the PyTorch forward semantics."""
    def mish(v):
        return v * jnp.tanh(jnp.logaddexp(v, 0.0))

    def lin(h, w, b):
        return h @ params[w] + params[b]

    emb = sinusoidal_pos_emb(time)
    t = lin(mish(lin(emb, "tw1", "tb1")), "tw2", "tb2")
    h = mish(lin(x, "aw1", "ab1"))
    h = mish(lin(h, "aw2", "ab2"))
    h = mish(lin(h, "aw3", "ab3"))
    z = jnp.concatenate([h, t], axis=1)
    z = mish(lin(z, "mw1", "mb1"))
    z = mish(lin(z, "mw2", "mb2"))
    z = mish(lin(z, "mw3", "mb3"))
    return lin(z, "fw", "fb")


if __name__ == "__main__":
    key = jax.random.PRNGKey(0)
    batch, action_dim = 2, 4
    k_params, k_x, k_t = jax.random.split(key, 3)

    params = init_params(k_params, action_dim)
    kparams = prepare_params(params)

    x = jax.random.normal(k_x, (batch, action_dim), jnp.float32)
    time = jax.random.uniform(k_t, (batch,), jnp.float32, 0.0, 10.0)

    out = mlp_forward(x, time, kparams)
    jax.block_until_ready(out)
    ref = mlp_forward_ref(x, time, params)
    assert out.shape == (batch, action_dim)
    # bf16 MXU path + approx-reciprocal Mish + bf16 output -> loose tolerance.
    assert jnp.allclose(out, ref, atol=5e-2, rtol=5e-2)

    # Exercise a multi-step grid (batch tiling + trailing-row padding path).
    k_x2, k_t2 = jax.random.split(k_x)
    x2 = jax.random.normal(k_x2, (50, action_dim), jnp.float32)
    t2 = jax.random.uniform(k_t2, (50,), jnp.float32, 0.0, 10.0)
    out2 = mlp_forward(x2, t2, kparams, block_b=16)
    jax.block_until_ready(out2)
    ref2 = mlp_forward_ref(x2, t2, params)
    assert out2.shape == (50, action_dim)
    assert jnp.allclose(out2, ref2, atol=5e-2, rtol=5e-2)

    print("KERNEL_OK")
</pallas_src>

<mosaic_0001>
module attributes {stable_mosaic.version = 11 : i64} {
  func.func @mlp_kernel(%arg0: i32, %arg1: memref<8x1xf32, #tpu.memory_space<vmem>>, %arg2: memref<8x4xf32, #tpu.memory_space<vmem>>, %arg3: memref<16x32xbf16, #tpu.memory_space<vmem>>, %arg4: memref<1x32xf32, #tpu.memory_space<vmem>>, %arg5: memref<32x32xbf16, #tpu.memory_space<vmem>>, %arg6: memref<1x32xf32, #tpu.memory_space<vmem>>, %arg7: memref<4x256xbf16, #tpu.memory_space<vmem>>, %arg8: memref<1x256xf32, #tpu.memory_space<vmem>>, %arg9: memref<256x256xbf16, #tpu.memory_space<vmem>>, %arg10: memref<1x256xf32, #tpu.memory_space<vmem>>, %arg11: memref<256x32xbf16, #tpu.memory_space<vmem>>, %arg12: memref<1x32xf32, #tpu.memory_space<vmem>>, %arg13: memref<32x256xbf16, #tpu.memory_space<vmem>>, %arg14: memref<1x256xf32, #tpu.memory_space<vmem>>, %arg15: memref<256x256xbf16, #tpu.memory_space<vmem>>, %arg16: memref<1x256xf32, #tpu.memory_space<vmem>>, %arg17: memref<256x256xbf16, #tpu.memory_space<vmem>>, %arg18: memref<1x256xf32, #tpu.memory_space<vmem>>, %arg19: memref<256x128xbf16, #tpu.memory_space<vmem>>, %arg20: memref<1x128xf32, #tpu.memory_space<vmem>>, %arg21: memref<8x128xbf16, #tpu.memory_space<vmem>>) attributes {dimension_semantics = [#tpu.dimension_semantics<parallel>], iteration_bounds = array<i64: 1>, scalar_prefetch = 0 : i64, scratch_operands = 0 : i64, tpu.core_type = #tpu.core_type<tc>, window_params = [{transform_indices = @transform_0, window_bounds = array<i64: 8, 1>}, {transform_indices = @transform_1, window_bounds = array<i64: 8, 4>}, {pipeline_mode = #tpu.pipeline_mode<synchronous>, transform_indices = @transform_2, window_bounds = array<i64: 16, 32>}, {pipeline_mode = #tpu.pipeline_mode<synchronous>, transform_indices = @transform_3, window_bounds = array<i64: 1, 32>}, {pipeline_mode = #tpu.pipeline_mode<synchronous>, transform_indices = @transform_4, window_bounds = array<i64: 32, 32>}, {pipeline_mode = #tpu.pipeline_mode<synchronous>, transform_indices = @transform_5, window_bounds = array<i64: 1, 32>}, {pipeline_mode = #tpu.pipeline_mode<synchronous>, transform_indices = @transform_6, window_bounds = array<i64: 4, 256>}, {pipeline_mode = #tpu.pipeline_mode<synchronous>, transform_indices = @transform_7, window_bounds = array<i64: 1, 256>}, {pipeline_mode = #tpu.pipeline_mode<synchronous>, transform_indices = @transform_8, window_bounds = array<i64: 256, 256>}, {pipeline_mode = #tpu.pipeline_mode<synchronous>, transform_indices = @transform_9, window_bounds = array<i64: 1, 256>}, {pipeline_mode = #tpu.pipeline_mode<synchronous>, transform_indices = @transform_10, window_bounds = array<i64: 256, 32>}, {pipeline_mode = #tpu.pipeline_mode<synchronous>, transform_indices = @transform_11, window_bounds = array<i64: 1, 32>}, {pipeline_mode = #tpu.pipeline_mode<synchronous>, transform_indices = @transform_12, window_bounds = array<i64: 32, 256>}, {pipeline_mode = #tpu.pipeline_mode<synchronous>, transform_indices = @transform_13, window_bounds = array<i64: 1, 256>}, {pipeline_mode = #tpu.pipeline_mode<synchronous>, transform_indices = @transform_14, window_bounds = array<i64: 256, 256>}, {pipeline_mode = #tpu.pipeline_mode<synchronous>, transform_indices = @transform_15, window_bounds = array<i64: 1, 256>}, {pipeline_mode = #tpu.pipeline_mode<synchronous>, transform_indices = @transform_16, window_bounds = array<i64: 256, 256>}, {pipeline_mode = #tpu.pipeline_mode<synchronous>, transform_indices = @transform_17, window_bounds = array<i64: 1, 256>}, {pipeline_mode = #tpu.pipeline_mode<synchronous>, transform_indices = @transform_18, window_bounds = array<i64: 256, 128>}, {pipeline_mode = #tpu.pipeline_mode<synchronous>, transform_indices = @transform_19, window_bounds = array<i64: 1, 128>}, {transform_indices = @transform_20, window_bounds = array<i64: 8, 128>}]} {
    %0 = tpu.iota {dimensions = array<i32: 1>} : vector<1x16xi32>
    %c8_i32 = arith.constant 8 : i32
    %1 = vector.broadcast %c8_i32 : i32 to vector<1x16xi32>
    %2 = arith.cmpi slt, %0, %1 : vector<1x16xi32>
    %c8_i32_0 = arith.constant 8 : i32
    %3 = vector.broadcast %c8_i32_0 : i32 to vector<1x16xi32>
    %4 = arith.subi %0, %3 : vector<1x16xi32>
    %5 = arith.select %2, %0, %4 : vector<1x16xi1>, vector<1x16xi32>
    %6 = arith.sitofp %5 : vector<1x16xi32> to vector<1x16xf32>
    %cst = arith.constant -1.31576288 : f32
    %7 = vector.broadcast %cst : f32 to vector<1x16xf32>
    %8 = arith.mulf %6, %7 : vector<1x16xf32>
    %9 = math.exp %8 : vector<1x16xf32>
    %c8_i32_1 = arith.constant 8 : i32
    %10 = vector.broadcast %c8_i32_1 : i32 to vector<1x16xi32>
    %11 = arith.cmpi slt, %0, %10 : vector<1x16xi32>
    %cst_2 = arith.constant -1.57079637 : f32
    %cst_3 = arith.constant 0.000000e+00 : f32
    %12 = vector.broadcast %cst_2 : f32 to vector<1x16xf32>
    %13 = vector.broadcast %cst_3 : f32 to vector<1x16xf32>
    %14 = arith.select %11, %12, %13 : vector<1x16xi1>, vector<1x16xf32>
    %c0 = arith.constant 0 : index
    %c0_4 = arith.constant 0 : index
    %15 = vector.load %arg1[%c0, %c0_4] : memref<8x1xf32, #tpu.memory_space<vmem>>, vector<8x1xf32>
    %16 = vector.broadcast %15 : vector<8x1xf32> to vector<8x16xf32>
    %17 = vector.broadcast %9 : vector<1x16xf32> to vector<8x16xf32>
    %18 = arith.mulf %16, %17 : vector<8x16xf32>
    %19 = vector.broadcast %14 : vector<1x16xf32> to vector<8x16xf32>
    %20 = arith.addf %18, %19 : vector<8x16xf32>
    %21 = math.cos %20 : vector<8x16xf32>
    %c0_5 = arith.constant 0 : index
    %c0_6 = arith.constant 0 : index
    %22 = vector.load %arg3[%c0_5, %c0_6] : memref<16x32xbf16, #tpu.memory_space<vmem>>, vector<16x32xbf16>
    %23 = arith.truncf %21 : vector<8x16xf32> to vector<8x16xbf16>
    %cst_7 = arith.constant dense<0.000000e+00> : vector<8x32xf32>
    %24 = tpu.matmul %23, %22, %cst_7 {dimension_numbers = #tpu.dot_dimension_numbers<[1], [0], [0], [1], [0, 0, 1, 1], [], []>} : vector<8x16xbf16>, vector<16x32xbf16>, vector<8x32xf32> -> vector<8x32xf32>
    %c0_8 = arith.constant 0 : index
    %c0_9 = arith.constant 0 : index
    %25 = vector.load %arg4[%c0_8, %c0_9] : memref<1x32xf32, #tpu.memory_space<vmem>>, vector<1x32xf32>
    %26 = vector.broadcast %25 : vector<1x32xf32> to vector<8x32xf32>
    %27 = arith.addf %24, %26 : vector<8x32xf32>
    %cst_10 = arith.constant 2.000000e+01 : f32
    %28 = vector.broadcast %cst_10 : f32 to vector<8x32xf32>
    %29 = arith.minimumf %27, %28 : vector<8x32xf32>
    %30 = math.exp %29 : vector<8x32xf32>
    %cst_11 = arith.constant 2.000000e+00 : f32
    %31 = vector.broadcast %cst_11 : f32 to vector<8x32xf32>
    %32 = arith.addf %30, %31 : vector<8x32xf32>
    %33 = arith.mulf %30, %32 : vector<8x32xf32>
    %34 = arith.mulf %27, %33 : vector<8x32xf32>
    %cst_12 = arith.constant 2.000000e+00 : f32
    %35 = vector.broadcast %cst_12 : f32 to vector<8x32xf32>
    %36 = arith.addf %33, %35 : vector<8x32xf32>
    %37 = tpu.reciprocal %36 {approx = true} : vector<8x32xf32> -> vector<8x32xf32>
    %38 = arith.mulf %34, %37 : vector<8x32xf32>
    %39 = arith.truncf %38 : vector<8x32xf32> to vector<8x32xbf16>
    %c0_13 = arith.constant 0 : index
    %c0_14 = arith.constant 0 : index
    %40 = vector.load %arg5[%c0_13, %c0_14] : memref<32x32xbf16, #tpu.memory_space<vmem>>, vector<32x32xbf16>
    %cst_15 = arith.constant dense<0.000000e+00> : vector<8x32xf32>
    %41 = tpu.matmul %39, %40, %cst_15 {dimension_numbers = #tpu.dot_dimension_numbers<[1], [0], [0], [1], [0, 0, 1, 1], [], []>} : vector<8x32xbf16>, vector<32x32xbf16>, vector<8x32xf32> -> vector<8x32xf32>
    %c0_16 = arith.constant 0 : index
    %c0_17 = arith.constant 0 : index
    %42 = vector.load %arg6[%c0_16, %c0_17] : memref<1x32xf32, #tpu.memory_space<vmem>>, vector<1x32xf32>
    %43 = vector.broadcast %42 : vector<1x32xf32> to vector<8x32xf32>
    %44 = arith.addf %41, %43 : vector<8x32xf32>
    %c0_18 = arith.constant 0 : index
    %c0_19 = arith.constant 0 : index
    %45 = vector.load %arg2[%c0_18, %c0_19] : memref<8x4xf32, #tpu.memory_space<vmem>>, vector<8x4xf32>
    %c0_20 = arith.constant 0 : index
    %c0_21 = arith.constant 0 : index
    %46 = vector.load %arg7[%c0_20, %c0_21] : memref<4x256xbf16, #tpu.memory_space<vmem>>, vector<4x256xbf16>
    %47 = arith.truncf %45 : vector<8x4xf32> to vector<8x4xbf16>
    %cst_22 = arith.constant dense<0.000000e+00> : vector<8x256xf32>
    %48 = tpu.matmul %47, %46, %cst_22 {dimension_numbers = #tpu.dot_dimension_numbers<[1], [0], [0], [1], [0, 0, 1, 1], [], []>} : vector<8x4xbf16>, vector<4x256xbf16>, vector<8x256xf32> -> vector<8x256xf32>
    %c0_23 = arith.constant 0 : index
    %c0_24 = arith.constant 0 : index
    %49 = vector.load %arg8[%c0_23, %c0_24] : memref<1x256xf32, #tpu.memory_space<vmem>>, vector<1x256xf32>
    %50 = vector.broadcast %49 : vector<1x256xf32> to vector<8x256xf32>
    %51 = arith.addf %48, %50 : vector<8x256xf32>
    %cst_25 = arith.constant 2.000000e+01 : f32
    %52 = vector.broadcast %cst_25 : f32 to vector<8x256xf32>
    %53 = arith.minimumf %51, %52 : vector<8x256xf32>
    %54 = math.exp %53 : vector<8x256xf32>
    %cst_26 = arith.constant 2.000000e+00 : f32
    %55 = vector.broadcast %cst_26 : f32 to vector<8x256xf32>
    %56 = arith.addf %54, %55 : vector<8x256xf32>
    %57 = arith.mulf %54, %56 : vector<8x256xf32>
    %58 = arith.mulf %51, %57 : vector<8x256xf32>
    %cst_27 = arith.constant 2.000000e+00 : f32
    %59 = vector.broadcast %cst_27 : f32 to vector<8x256xf32>
    %60 = arith.addf %57, %59 : vector<8x256xf32>
    %61 = tpu.reciprocal %60 {approx = true} : vector<8x256xf32> -> vector<8x256xf32>
    %62 = arith.mulf %58, %61 : vector<8x256xf32>
    %63 = arith.truncf %62 : vector<8x256xf32> to vector<8x256xbf16>
    %c0_28 = arith.constant 0 : index
    %c0_29 = arith.constant 0 : index
    %64 = vector.load %arg9[%c0_28, %c0_29] : memref<256x256xbf16, #tpu.memory_space<vmem>>, vector<256x256xbf16>
    %cst_30 = arith.constant dense<0.000000e+00> : vector<8x256xf32>
    %65 = tpu.matmul %63, %64, %cst_30 {dimension_numbers = #tpu.dot_dimension_numbers<[1], [0], [0], [1], [0, 0, 1, 1], [], []>} : vector<8x256xbf16>, vector<256x256xbf16>, vector<8x256xf32> -> vector<8x256xf32>
    %c0_31 = arith.constant 0 : index
    %c0_32 = arith.constant 0 : index
    %66 = vector.load %arg10[%c0_31, %c0_32] : memref<1x256xf32, #tpu.memory_space<vmem>>, vector<1x256xf32>
    %67 = vector.broadcast %66 : vector<1x256xf32> to vector<8x256xf32>
    %68 = arith.addf %65, %67 : vector<8x256xf32>
    %cst_33 = arith.constant 2.000000e+01 : f32
    %69 = vector.broadcast %cst_33 : f32 to vector<8x256xf32>
    %70 = arith.minimumf %68, %69 : vector<8x256xf32>
    %71 = math.exp %70 : vector<8x256xf32>
    %cst_34 = arith.constant 2.000000e+00 : f32
    %72 = vector.broadcast %cst_34 : f32 to vector<8x256xf32>
    %73 = arith.addf %71, %72 : vector<8x256xf32>
    %74 = arith.mulf %71, %73 : vector<8x256xf32>
    %75 = arith.mulf %68, %74 : vector<8x256xf32>
    %cst_35 = arith.constant 2.000000e+00 : f32
    %76 = vector.broadcast %cst_35 : f32 to vector<8x256xf32>
    %77 = arith.addf %74, %76 : vector<8x256xf32>
    %78 = tpu.reciprocal %77 {approx = true} : vector<8x256xf32> -> vector<8x256xf32>
    %79 = arith.mulf %75, %78 : vector<8x256xf32>
    %80 = arith.truncf %79 : vector<8x256xf32> to vector<8x256xbf16>
    %c0_36 = arith.constant 0 : index
    %c0_37 = arith.constant 0 : index
    %81 = vector.load %arg11[%c0_36, %c0_37] : memref<256x32xbf16, #tpu.memory_space<vmem>>, vector<256x32xbf16>
    %cst_38 = arith.constant dense<0.000000e+00> : vector<8x32xf32>
    %82 = tpu.matmul %80, %81, %cst_38 {dimension_numbers = #tpu.dot_dimension_numbers<[1], [0], [0], [1], [0, 0, 1, 1], [], []>} : vector<8x256xbf16>, vector<256x32xbf16>, vector<8x32xf32> -> vector<8x32xf32>
    %c0_39 = arith.constant 0 : index
    %c0_40 = arith.constant 0 : index
    %83 = vector.load %arg12[%c0_39, %c0_40] : memref<1x32xf32, #tpu.memory_space<vmem>>, vector<1x32xf32>
    %84 = vector.broadcast %83 : vector<1x32xf32> to vector<8x32xf32>
    %85 = arith.addf %82, %84 : vector<8x32xf32>
    %cst_41 = arith.constant 2.000000e+01 : f32
    %86 = vector.broadcast %cst_41 : f32 to vector<8x32xf32>
    %87 = arith.minimumf %85, %86 : vector<8x32xf32>
    %88 = math.exp %87 : vector<8x32xf32>
    %cst_42 = arith.constant 2.000000e+00 : f32
    %89 = vector.broadcast %cst_42 : f32 to vector<8x32xf32>
    %90 = arith.addf %88, %89 : vector<8x32xf32>
    %91 = arith.mulf %88, %90 : vector<8x32xf32>
    %92 = arith.mulf %85, %91 : vector<8x32xf32>
    %cst_43 = arith.constant 2.000000e+00 : f32
    %93 = vector.broadcast %cst_43 : f32 to vector<8x32xf32>
    %94 = arith.addf %91, %93 : vector<8x32xf32>
    %95 = tpu.reciprocal %94 {approx = true} : vector<8x32xf32> -> vector<8x32xf32>
    %96 = arith.mulf %92, %95 : vector<8x32xf32>
    %97 = arith.truncf %96 : vector<8x32xf32> to vector<8x32xbf16>
    %98 = arith.extf %97 : vector<8x32xbf16> to vector<8x32xf32>
    %99 = arith.addf %98, %44 : vector<8x32xf32>
    %c0_44 = arith.constant 0 : index
    %c0_45 = arith.constant 0 : index
    %100 = vector.load %arg13[%c0_44, %c0_45] : memref<32x256xbf16, #tpu.memory_space<vmem>>, vector<32x256xbf16>
    %101 = arith.truncf %99 : vector<8x32xf32> to vector<8x32xbf16>
    %cst_46 = arith.constant dense<0.000000e+00> : vector<8x256xf32>
    %102 = tpu.matmul %101, %100, %cst_46 {dimension_numbers = #tpu.dot_dimension_numbers<[1], [0], [0], [1], [0, 0, 1, 1], [], []>} : vector<8x32xbf16>, vector<32x256xbf16>, vector<8x256xf32> -> vector<8x256xf32>
    %c0_47 = arith.constant 0 : index
    %c0_48 = arith.constant 0 : index
    %103 = vector.load %arg14[%c0_47, %c0_48] : memref<1x256xf32, #tpu.memory_space<vmem>>, vector<1x256xf32>
    %104 = vector.broadcast %103 : vector<1x256xf32> to vector<8x256xf32>
    %105 = arith.addf %102, %104 : vector<8x256xf32>
    %cst_49 = arith.constant 2.000000e+01 : f32
    %106 = vector.broadcast %cst_49 : f32 to vector<8x256xf32>
    %107 = arith.minimumf %105, %106 : vector<8x256xf32>
    %108 = math.exp %107 : vector<8x256xf32>
    %cst_50 = arith.constant 2.000000e+00 : f32
    %109 = vector.broadcast %cst_50 : f32 to vector<8x256xf32>
    %110 = arith.addf %108, %109 : vector<8x256xf32>
    %111 = arith.mulf %108, %110 : vector<8x256xf32>
    %112 = arith.mulf %105, %111 : vector<8x256xf32>
    %cst_51 = arith.constant 2.000000e+00 : f32
    %113 = vector.broadcast %cst_51 : f32 to vector<8x256xf32>
    %114 = arith.addf %111, %113 : vector<8x256xf32>
    %115 = tpu.reciprocal %114 {approx = true} : vector<8x256xf32> -> vector<8x256xf32>
    %116 = arith.mulf %112, %115 : vector<8x256xf32>
    %117 = arith.truncf %116 : vector<8x256xf32> to vector<8x256xbf16>
    %c0_52 = arith.constant 0 : index
    %c0_53 = arith.constant 0 : index
    %118 = vector.load %arg15[%c0_52, %c0_53] : memref<256x256xbf16, #tpu.memory_space<vmem>>, vector<256x256xbf16>
    %cst_54 = arith.constant dense<0.000000e+00> : vector<8x256xf32>
    %119 = tpu.matmul %117, %118, %cst_54 {dimension_numbers = #tpu.dot_dimension_numbers<[1], [0], [0], [1], [0, 0, 1, 1], [], []>} : vector<8x256xbf16>, vector<256x256xbf16>, vector<8x256xf32> -> vector<8x256xf32>
    %c0_55 = arith.constant 0 : index
    %c0_56 = arith.constant 0 : index
    %120 = vector.load %arg16[%c0_55, %c0_56] : memref<1x256xf32, #tpu.memory_space<vmem>>, vector<1x256xf32>
    %121 = vector.broadcast %120 : vector<1x256xf32> to vector<8x256xf32>
    %122 = arith.addf %119, %121 : vector<8x256xf32>
    %cst_57 = arith.constant 2.000000e+01 : f32
    %123 = vector.broadcast %cst_57 : f32 to vector<8x256xf32>
    %124 = arith.minimumf %122, %123 : vector<8x256xf32>
    %125 = math.exp %124 : vector<8x256xf32>
    %cst_58 = arith.constant 2.000000e+00 : f32
    %126 = vector.broadcast %cst_58 : f32 to vector<8x256xf32>
    %127 = arith.addf %125, %126 : vector<8x256xf32>
    %128 = arith.mulf %125, %127 : vector<8x256xf32>
    %129 = arith.mulf %122, %128 : vector<8x256xf32>
    %cst_59 = arith.constant 2.000000e+00 : f32
    %130 = vector.broadcast %cst_59 : f32 to vector<8x256xf32>
    %131 = arith.addf %128, %130 : vector<8x256xf32>
    %132 = tpu.reciprocal %131 {approx = true} : vector<8x256xf32> -> vector<8x256xf32>
    %133 = arith.mulf %129, %132 : vector<8x256xf32>
    %134 = arith.truncf %133 : vector<8x256xf32> to vector<8x256xbf16>
    %c0_60 = arith.constant 0 : index
    %c0_61 = arith.constant 0 : index
    %135 = vector.load %arg17[%c0_60, %c0_61] : memref<256x256xbf16, #tpu.memory_space<vmem>>, vector<256x256xbf16>
    %cst_62 = arith.constant dense<0.000000e+00> : vector<8x256xf32>
    %136 = tpu.matmul %134, %135, %cst_62 {dimension_numbers = #tpu.dot_dimension_numbers<[1], [0], [0], [1], [0, 0, 1, 1], [], []>} : vector<8x256xbf16>, vector<256x256xbf16>, vector<8x256xf32> -> vector<8x256xf32>
    %c0_63 = arith.constant 0 : index
    %c0_64 = arith.constant 0 : index
    %137 = vector.load %arg18[%c0_63, %c0_64] : memref<1x256xf32, #tpu.memory_space<vmem>>, vector<1x256xf32>
    %138 = vector.broadcast %137 : vector<1x256xf32> to vector<8x256xf32>
    %139 = arith.addf %136, %138 : vector<8x256xf32>
    %cst_65 = arith.constant 2.000000e+01 : f32
    %140 = vector.broadcast %cst_65 : f32 to vector<8x256xf32>
    %141 = arith.minimumf %139, %140 : vector<8x256xf32>
    %142 = math.exp %141 : vector<8x256xf32>
    %cst_66 = arith.constant 2.000000e+00 : f32
    %143 = vector.broadcast %cst_66 : f32 to vector<8x256xf32>
    %144 = arith.addf %142, %143 : vector<8x256xf32>
    %145 = arith.mulf %142, %144 : vector<8x256xf32>
    %146 = arith.mulf %139, %145 : vector<8x256xf32>
    %cst_67 = arith.constant 2.000000e+00 : f32
    %147 = vector.broadcast %cst_67 : f32 to vector<8x256xf32>
    %148 = arith.addf %145, %147 : vector<8x256xf32>
    %149 = tpu.reciprocal %148 {approx = true} : vector<8x256xf32> -> vector<8x256xf32>
    %150 = arith.mulf %146, %149 : vector<8x256xf32>
    %151 = arith.truncf %150 : vector<8x256xf32> to vector<8x256xbf16>
    %c0_68 = arith.constant 0 : index
    %c0_69 = arith.constant 0 : index
    %152 = vector.load %arg19[%c0_68, %c0_69] : memref<256x128xbf16, #tpu.memory_space<vmem>>, vector<256x128xbf16>
    %cst_70 = arith.constant dense<0.000000e+00> : vector<8x128xf32>
    %153 = tpu.matmul %151, %152, %cst_70 {dimension_numbers = #tpu.dot_dimension_numbers<[1], [0], [0], [1], [0, 0, 1, 1], [], []>} : vector<8x256xbf16>, vector<256x128xbf16>, vector<8x128xf32> -> vector<8x128xf32>
    %c0_71 = arith.constant 0 : index
    %c0_72 = arith.constant 0 : index
    %154 = vector.load %arg20[%c0_71, %c0_72] : memref<1x128xf32, #tpu.memory_space<vmem>>, vector<1x128xf32>
    %155 = vector.broadcast %154 : vector<1x128xf32> to vector<8x128xf32>
    %156 = arith.addf %153, %155 : vector<8x128xf32>
    %157 = arith.truncf %156 : vector<8x128xf32> to vector<8x128xbf16>
    %c0_73 = arith.constant 0 : index
    %c0_74 = arith.constant 0 : index
    %158 = vector.load %arg21[%c0_73, %c0_74] : memref<8x128xbf16, #tpu.memory_space<vmem>>, vector<8x128xbf16>
    tpu.vector_store %arg21[%c0_73, %c0_74], %157 {strides = array<i32>} : memref<8x128xbf16, #tpu.memory_space<vmem>>, vector<8x128xbf16>,
    return
  }
  func.func @transform_0(%arg0: i32) -> (i32, i32) {
    %c0_i32 = arith.constant 0 : i32
    %c0_i32_0 = arith.constant 0 : i32
    return %arg0, %c0_i32 : i32, i32
  }
  func.func @transform_1(%arg0: i32) -> (i32, i32) {
    %c0_i32 = arith.constant 0 : i32
    %c0_i32_0 = arith.constant 0 : i32
    return %arg0, %c0_i32 : i32, i32
  }
  func.func @transform_2(%arg0: i32) -> (i32, i32) {
    %c0_i32 = arith.constant 0 : i32
    %c0_i32_0 = arith.constant 0 : i32
    %c0_i32_1 = arith.constant 0 : i32
    return %c0_i32, %c0_i32_0 : i32, i32
  }
  func.func @transform_3(%arg0: i32) -> (i32, i32) {
    %c0_i32 = arith.constant 0 : i32
    %c0_i32_0 = arith.constant 0 : i32
    %c0_i32_1 = arith.constant 0 : i32
    return %c0_i32, %c0_i32_0 : i32, i32
  }
  func.func @transform_4(%arg0: i32) -> (i32, i32) {
    %c0_i32 = arith.constant 0 : i32
    %c0_i32_0 = arith.constant 0 : i32
    %c0_i32_1 = arith.constant 0 : i32
    return %c0_i32, %c0_i32_0 : i32, i32
  }
  func.func @transform_5(%arg0: i32) -> (i32, i32) {
    %c0_i32 = arith.constant 0 : i32
    %c0_i32_0 = arith.constant 0 : i32
    %c0_i32_1 = arith.constant 0 : i32
    return %c0_i32, %c0_i32_0 : i32, i32
  }
  func.func @transform_6(%arg0: i32) -> (i32, i32) {
    %c0_i32 = arith.constant 0 : i32
    %c0_i32_0 = arith.constant 0 : i32
    %c0_i32_1 = arith.constant 0 : i32
    return %c0_i32, %c0_i32_0 : i32, i32
  }
  func.func @transform_7(%arg0: i32) -> (i32, i32) {
    %c0_i32 = arith.constant 0 : i32
    %c0_i32_0 = arith.constant 0 : i32
    %c0_i32_1 = arith.constant 0 : i32
    return %c0_i32, %c0_i32_0 : i32, i32
  }
  func.func @transform_8(%arg0: i32) -> (i32, i32) {
    %c0_i32 = arith.constant 0 : i32
    %c0_i32_0 = arith.constant 0 : i32
    %c0_i32_1 = arith.constant 0 : i32
    return %c0_i32, %c0_i32_0 : i32, i32
  }
  func.func @transform_9(%arg0: i32) -> (i32, i32) {
    %c0_i32 = arith.constant 0 : i32
    %c0_i32_0 = arith.constant 0 : i32
    %c0_i32_1 = arith.constant 0 : i32
    return %c0_i32, %c0_i32_0 : i32, i32
  }
  func.func @transform_10(%arg0: i32) -> (i32, i32) {
    %c0_i32 = arith.constant 0 : i32
    %c0_i32_0 = arith.constant 0 : i32
    %c0_i32_1 = arith.constant 0 : i32
    return %c0_i32, %c0_i32_0 : i32, i32
  }
  func.func @transform_11(%arg0: i32) -> (i32, i32) {
    %c0_i32 = arith.constant 0 : i32
    %c0_i32_0 = arith.constant 0 : i32
    %c0_i32_1 = arith.constant 0 : i32
    return %c0_i32, %c0_i32_0 : i32, i32
  }
  func.func @transform_12(%arg0: i32) -> (i32, i32) {
    %c0_i32 = arith.constant 0 : i32
    %c0_i32_0 = arith.constant 0 : i32
    %c0_i32_1 = arith.constant 0 : i32
    return %c0_i32, %c0_i32_0 : i32, i32
  }
  func.func @transform_13(%arg0: i32) -> (i32, i32) {
    %c0_i32 = arith.constant 0 : i32
    %c0_i32_0 = arith.constant 0 : i32
    %c0_i32_1 = arith.constant 0 : i32
    return %c0_i32, %c0_i32_0 : i32, i32
  }
  func.func @transform_14(%arg0: i32) -> (i32, i32) {
    %c0_i32 = arith.constant 0 : i32
    %c0_i32_0 = arith.constant 0 : i32
    %c0_i32_1 = arith.constant 0 : i32
    return %c0_i32, %c0_i32_0 : i32, i32
  }
  func.func @transform_15(%arg0: i32) -> (i32, i32) {
    %c0_i32 = arith.constant 0 : i32
    %c0_i32_0 = arith.constant 0 : i32
    %c0_i32_1 = arith.constant 0 : i32
    return %c0_i32, %c0_i32_0 : i32, i32
  }
  func.func @transform_16(%arg0: i32) -> (i32, i32) {
    %c0_i32 = arith.constant 0 : i32
    %c0_i32_0 = arith.constant 0 : i32
    %c0_i32_1 = arith.constant 0 : i32
    return %c0_i32, %c0_i32_0 : i32, i32
  }
  func.func @transform_17(%arg0: i32) -> (i32, i32) {
    %c0_i32 = arith.constant 0 : i32
    %c0_i32_0 = arith.constant 0 : i32
    %c0_i32_1 = arith.constant 0 : i32
    return %c0_i32, %c0_i32_0 : i32, i32
  }
  func.func @transform_18(%arg0: i32) -> (i32, i32) {
    %c0_i32 = arith.constant 0 : i32
    %c0_i32_0 = arith.constant 0 : i32
    %c0_i32_1 = arith.constant 0 : i32
    return %c0_i32, %c0_i32_0 : i32, i32
  }
  func.func @transform_19(%arg0: i32) -> (i32, i32) {
    %c0_i32 = arith.constant 0 : i32
    %c0_i32_0 = arith.constant 0 : i32
    %c0_i32_1 = arith.constant 0 : i32
    return %c0_i32, %c0_i32_0 : i32, i32
  }
  func.func @transform_20(%arg0: i32) -> (i32, i32) {
    %c0_i32 = arith.constant 0 : i32
    %c0_i32_0 = arith.constant 0 : i32
    return %arg0, %c0_i32 : i32, i32
  }
}

</mosaic_0001>

<bundles_post_ra>
// kernel: tpu_custom_call.1
= control target key start
LH: loop header
LB: loop body
LE: loop exit
PB: predicated region body
PF: predicated region fallthrough
CT: control target
= control target key end

     0   :  { %s2634_s0 = inlined_call_operand.vmem [shape: f32[8,1], index: 0, kind: input, shape index: {}]   ;;  %s2635_s1 = inlined_call_operand.vmem [shape: f32[8,4], index: 1, kind: input, shape index: {}]   ;;  %s2636_s2 = inlined_call_operand.vmem [shape: bf16[16,32], index: 2, kind: input, shape index: {}]   ;;  %s2637_s3 = inlined_call_operand.vmem [shape: f32[1,32], index: 3, kind: input, shape index: {}]   ;;  %s2638_s4 = inlined_call_operand.vmem [shape: bf16[32,32], index: 4, kind: input, shape index: {}]   ;;  %s2639_s5 = inlined_call_operand.vmem [shape: f32[1,32], index: 5, kind: input, shape index: {}]   ;;  %s2640_s6 = inlined_call_operand.vmem [shape: bf16[4,256], index: 6, kind: input, shape index: {}]   ;;  %s2641_s7 = inlined_call_operand.vmem [shape: f32[1,256], index: 7, kind: input, shape index: {}]   ;;  %s2642_s8 = inlined_call_operand.hbm [shape: bf16[256,256], index: 8, kind: input, shape index: {}]   ;;  %s2643_s9 = inlined_call_operand.vmem [shape: f32[1,256], index: 9, kind: input, shape index: {}]   ;;  %s2644_s10 = inlined_call_operand.vmem [shape: bf16[256,32], index: 10, kind: input, shape index: {}]   ;;  %s2645_s11 = inlined_call_operand.vmem [shape: f32[1,32], index: 11, kind: input, shape index: {}]   ;;  %s2646_s12 = inlined_call_operand.vmem [shape: bf16[32,256], index: 12, kind: input, shape index: {}]   ;;  %s2647_s13 = inlined_call_operand.vmem [shape: f32[1,256], index: 13, kind: input, shape index: {}]   ;;  %s2648_s14 = inlined_call_operand.hbm [shape: bf16[256,256], index: 14, kind: input, shape index: {}]   ;;  %s2649_s15 = inlined_call_operand.vmem [shape: f32[1,256], index: 15, kind: input, shape index: {}]   ;;  %s2650_s16 = inlined_call_operand.hbm [shape: bf16[256,256], index: 16, kind: input, shape index: {}]   ;;  %s2651_s17 = inlined_call_operand.vmem [shape: f32[1,256], index: 17, kind: input, shape index: {}]   ;;  %s2652_s18 = inlined_call_operand.vmem [shape: bf16[256,128], index: 18, kind: input, shape index: {}]   ;;  %s2653_s19 = inlined_call_operand.vmem [shape: f32[1,128], index: 19, kind: input, shape index: {}]   ;;  %s2654_s20 = inlined_call_operand.hbm [shape: bf16[8,128], index: 20, kind: output, shape index: {}]  }
   0x1   :  { %2656 = sst [smem:[#allocation12_spill]] %s2634_s0 }
   0x2   :  { %2657 = sst [smem:[#allocation13_spill]] %s2635_s1 }
   0x3   :  { %2658 = sst [smem:[#allocation14_spill]] %s2636_s2 }
   0x4   :  { %2659 = sst [smem:[#allocation15_spill]] %s2637_s3 }
   0x5   :  { %2660 = sst [smem:[#allocation16_spill]] %s2638_s4 }
   0x6   :  { %25 = vsyncpa [#allocation3], 0 }
   0x7   :  { %26 = vsyncpa [#allocation6], 0 }
   0x8   :  { %27 = vsyncpa [#allocation4], 0  ;;  %s2296_s1 = smov [#allocation5]   ;;  %s2297_s23 = smov [#allocation2]  }
   0x9   :  { %s71_s22 = sshll.u32 %s2296_s1, 4  ;;  %s49_s24 = sshll.u32 %s2297_s23, 4  ;;  %s72_s22 = int_to_ptr.vmem [resolvable:$true] %s71_s22  ;;  %s50_s24 = int_to_ptr.vmem [resolvable:$true] %s49_s24 }
   0xa   :  { %s2218_s2 = scalar_lea.vmem %s72_s22, 4096  ;;  %p2223_p1 = scmp.lt.s32.totalorder %s72_s22, %s72_s22 }
   0xb   :  { %p2219_p0 = scmp.ne.s32.totalorder %s72_s22, %s2218_s2  ;;  %p2224_p2 = scmp.lt.s32.totalorder %s2218_s2, %s2218_s2 }
   0xd   :  { %p2225_p3 = por %p2224_p2, %p2223_p1 }
   0xf   :  { %p2226_p4 = pnand %p2225_p3, %p2219_p0 }
  0x11   :  { %2229 = shalt.err (!%p2226_p4)
}
  0x12   :  { %s2298_s25 = smov 128   ;;  %s2299_s3 = smov 8  }
  0x13   :  { %77 = dma.hbm_to_vmem [thread:$0]  %s2648_s14, 4096, %s72_s22, [#allocation6], %s2298_s25, %s2298_s25, %s2299_s3  }
  0x14   :  { %s2238_s28 = scalar_lea.vmem %s50_s24, 4096  ;;  %p2243_p6 = scmp.lt.s32.totalorder %s50_s24, %s50_s24 }
  0x15   :  { %p2239_p5 = scmp.ne.s32.totalorder %s50_s24, %s2238_s28  ;;  %p2244_p7 = scmp.lt.s32.totalorder %s2238_s28, %s2238_s28 }
  0x17   :  { %p2245_p8 = por %p2244_p7, %p2243_p6 }
  0x19   :  { %p2246_p9 = pnand %p2245_p8, %p2239_p5 }
  0x1b   :  { %2249 = shalt.err (!%p2246_p9)
}
  0x1c   :  { %55 = dma.hbm_to_vmem [thread:$0]  %s2642_s8, 4096, %s50_s24, [#allocation3], %s2298_s25, %s2298_s25, %s2299_s3  }
  0x1d   :  { %s2300_s30 = smov [#allocation7]  }
  0x1e   :  { %s85_s0 = sshll.u32 %s2300_s30, 4  ;;  %s86_s0 = int_to_ptr.vmem [resolvable:$true] %s85_s0 }
  0x1f   :  { %s2258_s21 = scalar_lea.vmem %s86_s0, 4096  ;;  %p2263_p11 = scmp.lt.s32.totalorder %s86_s0, %s86_s0 }
  0x20   :  { %p2259_p10 = scmp.ne.s32.totalorder %s86_s0, %s2258_s21  ;;  %p2264_p12 = scmp.lt.s32.totalorder %s2258_s21, %s2258_s21 }
  0x22   :  { %p2265_p13 = por %p2264_p12, %p2263_p11 }
  0x24   :  { %p2266_p0 = pnand %p2265_p13, %p2259_p10 }
  0x26   :  { %2269 = shalt.err (!%p2266_p0)
}
  0x27   :  { %91 = dma.hbm_to_vmem [thread:$0]  %s2650_s16, 4096, %s86_s0, [#allocation6], %s2298_s25, %s2298_s25, %s2299_s3  }
  0x28   :  { %2290 = dma.done.wait [#allocation3], 4096  }
  0x29   :  { %2291 = vsyncadd [#allocation3], 4294963200 }
  0x2a   :  { %2292 = dma.done.wait [#allocation6], 8192  }
  0x2b   :  { %2293 = vsyncadd [#allocation6], 4294959104  ;;  %v2301_v0 = vmov 0   ;;  %v2302_v1 = vmov 0.0   ;;  %s2661_s23 = sld [smem:[#allocation12_spill]]  ;;  %vm2303_vm0 = vmmov 0   ;;  %v108_v4 = vlaneseq }
  0x2c   :  { %1970 = vset.pattern.permute.xlu0 %v2301_v0  ;;  %1937 = vmatprep.subr.bf16.mxu1 %v2302_v1  ;;  %s2662_s16 = sld [smem:[#allocation14_spill]]  ;;  %v1750_v6 = vld.sshfl [vmem:[%s2640_s6] sm:$0x33 pattern:$0x76325410]  ;;  %vm394_vm1 = vcmask 1041408  }
  0x2d   :  { %433 = vmatprep.mubr.bf16.mxu0 %v2301_v0  ;;  %1939 = vmatprep.mubr.msk.bf16.mxu1 %vm2303_vm0, %v2302_v1  ;;  %v109_v5 = vand.u32 127, %v108_v4  ;;  %s2663_s28 = sld [smem:[#allocation13_spill]]  ;;  %v389_v8 = vcombine.high %v1750_v6, %v1750_v6  ;;  %v396_v9 = vsel %vm394_vm1, %v1750_v6, 0  ;;  %vm390_vm3 = vcmask 31744   ;;  %s2310_s6 = smov [#allocation8]  }
  0x2e   :  { %v2304_v31 = vmov 683565275   ;;  %v2305_v33 = vmov 2475754826   ;;  %v2306_v36 = vmov 2131351028  }
  0x2f   :  { %v1738_v10 = vadd.s32 4294967288, %v109_v5  ;;  %vm110_vm2 = vcmp.lt.s32.totalorder %v109_v5, 8  ;;  %1751 = vmatprep.subr.msk.bf16.mxu0 %vm394_vm1, %v389_v8  ;;  %v2307_v39 = vmov 2102212464   ;;  %v2308_v42 = vmov 920167782  }
  0x30   :  { %416 = vmatpush1.bf16.msra.mxu0 %v396_v9  ;;  %v117_v17 = vsel %vm110_vm2, -1.5707964, %v2302_v1  ;;  %v2309_v45 = vmov 1326507024   ;;  %s2664_s29 = sld [smem:[#allocation16_spill]]  ;;  %s1728_s4 = sshll.u32 %s2310_s6, 4  ;;  %s1729_s4 = int_to_ptr.vmem [resolvable:$true] %s1728_s4 }
  0x31   :  { %v118_v2 = vld [vmem:[%s2661_s23] sm:$0xff]  ;;  %v112_v12 = vsel %vm110_vm2, %v109_v5, %v1738_v10  ;;  %vm245_vm2 = vcmask 130048   ;;  %s2665_s22 = sld [smem:[#allocation15_spill]]  ;;  %p2275_p2 = scmp.lt.s32.totalorder %s1729_s4, %s1729_s4 }
  0x32   :  { %121 = vperm.xlu0 %1970, %v118_v2   ;;  %v1971_v3 = vld [vmem:[%s2662_s16] sm:$0xff]   ;;  %v113_v13 = vcvt.s32.f32 %v112_v12 }
  0x33   :  { %1938 = vmatpush3.bf16.msra.mxu1 %v1971_v3  ;;  %v366_v7 = vld [vmem:[%s2663_s28] sm:$0xff] }
  0x34   :  { %1943 = vmatprep.subr.bf16.mxu1 %v2302_v1  ;;  %v368_v11 = vpack.c.bf16 %v366_v7, %v366_v7  ;;  %v114_v14 = vmul.f32 -1.3157629, %v113_v13 }
  0x36   :  { %1752 = vmatmul.mubr.msk.bf16.vlgmr.msra.gmra.mxu0 %vm390_vm3, %v368_v11  ;;  %v115_v15 = vmul.f32 1.442695, %v114_v14 }
  0x38   :  { %2156 = vpow2.f32 %v115_v15 }
  0x45   :  { %v2157_v16 = vpop.eup %2156 }
  0xad   :  { %v122_v18 = vpop.permute.xlu0 %121 }
  0xae   :  { %v124_v19 = vmul.f32 %v2157_v16, %v122_v18 }
  0xb0   :  { %v2445_v20 = vadd.f32 %v124_v19, %v117_v17 }
  0xb2   :  { %v129_v21 = vand.u32 2139095040, %v2445_v20  ;;  %v126_v25 = vand.u32 2147483647, %v2445_v20  ;;  %vm128_vm11 = vcmp.lt.s32.totalorder %v2445_v20, 0  ;;  %vm218_vm1 = vweird.f32 %v2445_v20 }
  0xb4   :  { %v130_v22 = vshrl.u32 %v129_v21, 23  ;;  %v133_v28 = vand.u32 8388607, %v126_v25  ;;  %vm127_vm12 = vcmp.le.f32.partialorder %v126_v25, 0.7853982 }
  0xb6   :  { %v1739_v23 = vadd.s32 4294967169, %v130_v22  ;;  %v134_v47 = vor.u32 8388608, %v133_v28 }
  0xb8   :  { %v136_v24 = vadd.s32 1, %v1739_v23  ;;  %v174_v61 = vshll.u32 %v134_v47, 8 }
  0xba   :  { %vm137_vm4 = vcmp.gt.s32.totalorder %v136_v24, 0 }
  0xbb   :  { %v138_v26 = vsel %vm137_vm4, %v136_v24, 0 }
  0xbc   :  { %v140_v27 = vand.u32 31, %v138_v26  ;;  %v139_v30 = vshrl.u32 %v138_v26, 5 }
  0xbe   :  { %v141_v29 = vsub.s32 32, %v140_v27  ;;  %v143_v32 = vshll.u32 %v2304_v31, %v140_v27  ;;  %v146_v34 = vshll.u32 %v2305_v33, %v140_v27  ;;  %v149_v38 = vshll.u32 %v2306_v36, %v140_v27 }
  0xbf   :  { %v152_v41 = vshll.u32 %v2307_v39, %v140_v27  ;;  %v155_v44 = vshll.u32 %v2308_v42, %v140_v27  ;;  %vm158_vm5 = vcmp.lt.s32.totalorder %v139_v30, 1  ;;  %vm161_vm6 = vcmp.lt.s32.totalorder %v139_v30, 4 }
  0xc0   :  { %v144_v35 = vshrl.u32 %v2305_v33, %v141_v29  ;;  %v147_v37 = vshrl.u32 %v2306_v36, %v141_v29  ;;  %v150_v40 = vshrl.u32 %v2307_v39, %v141_v29  ;;  %v153_v43 = vshrl.u32 %v2308_v42, %v141_v29 }
  0xc1   :  { %v156_v46 = vshrl.u32 %v2309_v45, %v141_v29  ;;  %v142_v56 = vshrl.u32 %v2304_v31, %v141_v29  ;;  %vm160_vm7 = vcmp.lt.s32.totalorder %v139_v30, 3  ;;  %vm159_vm8 = vcmp.lt.s32.totalorder %v139_v30, 2 }
  0xc2   :  { %v145_v48 = vor.u32 %v144_v35, %v143_v32  ;;  %v148_v49 = vor.u32 %v147_v37, %v146_v34  ;;  %v151_v50 = vor.u32 %v150_v40, %v149_v38  ;;  %v154_v51 = vor.u32 %v153_v43, %v152_v41 }
  0xc3   :  { %v157_v52 = vor.u32 %v156_v46, %v155_v44 }
  0xc4   :  { %v163_v53 = vsel %vm161_vm6, %v151_v50, 2102212464  ;;  %v166_v54 = vsel %vm158_vm5, %v145_v48, %v148_v49  ;;  %v170_v55 = vsel %vm158_vm5, %v148_v49, %v151_v50  ;;  %v167_v57 = vsel %vm161_vm6, %v154_v51, 920167782 }
  0xc5   :  { %v171_v58 = vsel %vm161_vm6, %v157_v52, 1326507024  ;;  %v168_v59 = vsel %vm160_vm7, %v151_v50, %v167_v57  ;;  %v162_v62 = vsel %vm158_vm5, %v142_v56, %v145_v48  ;;  %v164_v63 = vsel %vm160_vm7, %v148_v49, %v163_v53  ;;  %v1972_v56 = vld [vmem:[%s2664_s29 + $0x8] sm:$0xff]   ;;  %v1976_v57 = vld [vmem:[#allocation2 + $0x74] ss:$8 sps:$4 sm:$0xff]  }
  0xc6   :  { %v172_v60 = vsel %vm160_vm7, %v154_v51, %v171_v58  ;;  %v169_v2 = vsel %vm159_vm8, %v166_v54, %v168_v59  ;;  %v165_v9 = vsel %vm159_vm8, %v162_v62, %v164_v63  ;;  %v372_v58 = vshrl.u32 %v108_v4, 7 }
  0xc7   :  { %v173_v3 = vsel %vm159_vm8, %v170_v55, %v172_v60  ;;  %v2454_v7 = vmul.u32.u64.low %v174_v61, %v169_v2  ;;  %v2455_v8 = vmul.u32.u64.high %v174_v61, %v169_v2, %v2454_v7  ;;  %v181_v11 = vmul.u32 %v174_v61, %v165_v9  ;;  %v369_v60 = vld [vmem:[%s2641_s7] sm:$0x3] }
  0xc8   :  { %v2451_v5 = vmul.u32.u64.low %v174_v61, %v173_v3  ;;  %v2452_v6 = vmul.u32.u64.high %v174_v61, %v173_v3, %v2451_v5  ;;  %v2476_v59 = vsub.s32 1, %v372_v58  ;;  %v1743_v2 = vld [vmem:[%s2665_s22] ss:$0 sm:$0xff] }
  0xc9   :  { %v184_v10 = vadd.s32 1, %v2455_v8 }
  0xca   :  { %vm183_vm9 = vc.u32 %v2452_v6, %v2454_v7  ;;  %v182_v24 = vadd.s32 %v2454_v7, %v2452_v6  ;;  %v378_v61 = vrot.slane %v369_v60, %v2476_v59 }
  0xcb   :  { %v185_v12 = vsel %vm183_vm9, %v184_v10, %v2455_v8 }
  0xcc   :  { %v186_v13 = vadd.s32 %v185_v12, %v181_v11 }
  0xce   :  { %v187_v14 = vadd.s32 536870912, %v186_v13 }
  0xd0   :  { %v188_v15 = vshrl.u32 %v187_v14, 30 }
  0xd2   :  { %v189_v16 = vshll.u32 %v188_v15, 30  ;;  %v212_v40 = vsub.s32 4, %v188_v15 }
  0xd4   :  { %v190_v17 = vsub.s32 %v186_v13, %v189_v16  ;;  %v213_v41 = vsel %vm128_vm11, %v212_v40, %v188_v15  ;;  %v1988_v40 = vld [vmem:[#allocation2 + $0x34] ss:$8 sps:$4 sm:$0xff]  }
  0xd5   :  { %v215_v42 = vsel %vm127_vm12, 0, %v213_v41  ;;  %v1986_v41 = vld [vmem:[#allocation2 + $0x30] ss:$8 sps:$4 sm:$0xff]  }
  0xd6   :  { %v192_v18 = vsub.s32 0, %v190_v17  ;;  %v219_v43 = vand.u32 3, %v215_v42  ;;  %v1991_v42 = vld [vmem:[#allocation2 + $0x24] ss:$8 sps:$4 sm:$0xff]  }
  0xd8   :  { %v1740_v19 = vmin.u32 %v192_v18, %v190_v17  ;;  %vm224_vm13 = vcmp.eq.s32.totalorder %v219_v43, 2  ;;  %vm221_vm14 = vcmp.eq.s32.totalorder %v219_v43, 0  ;;  %vm220_vm15 = vcmp.lt.s32.totalorder %v219_v43, 2  ;;  %v1989_v43 = vld [vmem:[#allocation2 + $0x20] ss:$8 sps:$4 sm:$0xff]  }
  0xda   :  { %v194_v21 = vclz %v1740_v19 }
  0xdc   :  { %v1741_v22 = vadd.s32 4294967294, %v194_v21 }
  0xde   :  { %vm1742_vm10 = vcmp.lt.s32.totalorder %v1741_v22, 0 }
  0xdf   :  { %v197_v23 = vsel %vm1742_vm10, 0, %v1741_v22 }
  0xe0   :  { %v198_v26 = vsub.s32 32, %v197_v23  ;;  %v202_v27 = vsub.s32 4294967266, %v197_v23  ;;  %v199_v28 = vshll.u32 %v190_v17, %v197_v23  ;;  %v2485_v23 = vsub.s32 0, %v372_v58  ;;  %v2012_v58 = vld [vmem:[#allocation2 + $0xb4] ss:$8 sps:$4 sm:$0xff]  }
  0xe2   :  { %v200_v29 = vshrl.u32 %v182_v24, %v198_v26  ;;  %v203_v30 = vadd.s32 127, %v202_v27  ;;  %v1974_v27 = vld [vmem:[#allocation2 + $0x70] ss:$8 sps:$4 sm:$0xff]  }
  0xe4   :  { %v201_v31 = vor.u32 %v200_v29, %v199_v28  ;;  %v204_v32 = vshll.u32 %v203_v30, 23  ;;  %v374_v30 = vrot.slane %v369_v60, %v2485_v23  ;;  %v2010_v60 = vld [vmem:[#allocation2 + $0xb0] ss:$8 sps:$4 sm:$0xff]  }
  0xe6   :  { %v205_v33 = vor.u32 4788187, %v204_v32  ;;  %v208_v35 = vcvt.s32.f32 %v201_v31  ;;  %v1979_v31 = vld [vmem:[#allocation2 + $0x64] ss:$8 sps:$4 sm:$0xff]   ;;  %v1977_v32 = vld [vmem:[#allocation2 + $0x60] ss:$8 sps:$4 sm:$0xff]  }
  0xe8   :  { %v206_v34 = vand.u32 2147483647, %v205_v33 }
  0xea   :  { %v209_v36 = vmul.f32 %v208_v35, %v206_v34  ;;  %v1982_v34 = vld [vmem:[#allocation2 + $0x54] ss:$8 sps:$4 sm:$0xff]   ;;  %v1980_v35 = vld [vmem:[#allocation2 + $0x50] ss:$8 sps:$4 sm:$0xff]  }
  0xec   :  { %v210_v37 = vxor.u32 2147483648, %v209_v36 }
  0xee   :  { %v211_v38 = vsel %vm128_vm11, %v210_v37, %v209_v36  ;;  %v1985_v37 = vld [vmem:[#allocation2 + $0x44] ss:$8 sps:$4 sm:$0xff]  }
  0xef   :  { %v214_v39 = vsel %vm127_vm12, %v2445_v20, %v211_v38  ;;  %v1973_v20 = vld [vmem:[%s2664_s29] sm:$0xff]   ;;  %s2270_s29 = scalar_lea.vmem %s1729_s4, 64 }
  0xf0   :  { %2158 = vcosq.f32 %v214_v39  ;;  %v1983_v38 = vld [vmem:[#allocation2 + $0x40] ss:$8 sps:$4 sm:$0xff]   ;;  %p2271_p1 = scmp.ne.s32.totalorder %s1729_s4, %s2270_s29  ;;  %p2276_p3 = scmp.lt.s32.totalorder %s2270_s29, %s2270_s29 }
  0xf1   :  { %2160 = vsinq.f32 %v214_v39 }
  0xf2   :  { %p2277_p4 = por %p2276_p3, %p2275_p2 }
  0xf4   :  { %p2278_p5 = pnand %p2277_p4, %p2271_p1 }
  0xf6   :  { %v435_v52 = vpop.f32.mrf.mxu0 }
  0xf7   :  { %v436_v33 = vadd.f32 %v435_v52, %v374_v30  ;;  %v2001_v52 = vld [vmem:[#allocation2 + $0xe0] ss:$8 sps:$4 sm:$0xff]  }
  0xf8   :  { %v437_v53 = vpop.f32.mrf.mxu0 }
  0xf9   :  { %v438_v62 = vadd.f32 %v437_v53, %v378_v61  ;;  %v442_v36 = vmin.f32 %v436_v33, 20.0  ;;  %v2015_v61 = vld [vmem:[#allocation2 + $0xa4] ss:$8 sps:$4 sm:$0xff]  }
  0xfa   :  { %v439_v54 = vpop.f32.mrf.mxu0 }
  0xfb   :  { %v443_v63 = vmin.f32 %v438_v62, 20.0  ;;  %v444_v39 = vmul.f32 1.442695, %v442_v36  ;;  %v2006_v54 = vld [vmem:[#allocation2 + $0xd4] ss:$8 sps:$4 sm:$0xff]  }
  0xfc   :  { %v440_v55 = vpop.f32.mrf.mxu0 }
  0xfd   :  { %v2159_v44 = vpop.eup %2158  ;;  %v2004_v55 = vld [vmem:[#allocation2 + $0xd0] ss:$8 sps:$4 sm:$0xff]  }
  0xfe   :  { %v2161_v45 = vpop.eup %2160  ;;  %v225_v46 = vxor.u32 2147483648, %v2159_v44 }
  0xff   :  { %v222_v47 = vxor.u32 2147483648, %v2161_v45 }
 0x100   :  { %v226_v48 = vsel %vm224_vm13, %v225_v46, %v2161_v45  ;;  %v1992_v45 = vld [vmem:[#allocation2 + $0x10] ss:$8 sps:$4 sm:$0xff]   ;;  %v1997_v46 = vld [vmem:[#allocation2 + $0x4] ss:$8 sps:$4 sm:$0xff]  }
 0x101   :  { %v223_v49 = vsel %vm221_vm14, %v2159_v44, %v222_v47  ;;  %v1994_v44 = vld [vmem:[#allocation2 + $0x14] ss:$8 sps:$4 sm:$0xff]   ;;  %v1995_v47 = vld [vmem:[#allocation2] ss:$8 sps:$4 sm:$0xff]  }
 0x102   :  { %v227_v25 = vsel %vm220_vm15, %v223_v49, %v226_v48  ;;  %v2000_v48 = vld [vmem:[#allocation2 + $0xf4] ss:$8 sps:$4 sm:$0xff]  }
 0x103   :  { %v228_v50 = vsel %vm218_vm1, nan, %v227_v25  ;;  %v1998_v25 = vld [vmem:[#allocation2 + $0xf0] ss:$8 sps:$4 sm:$0xff]  }
 0x104   :  { %v231_v51 = vpack.c.bf16 %v228_v50, %v228_v50 }
 0x106   :  { %1940 = vmatmul.mubr.msk.bf16.vlgmr.msra.gmra.mxu1 %vm245_vm2, %v231_v51  ;;  %v2003_v51 = vld [vmem:[#allocation2 + $0xe4] ss:$8 sps:$4 sm:$0xff]  }
 0x107   :  { %1947 = vmatprep.mubr.msk.bf16.mxu1 %vm2303_vm0, %v2302_v1  ;;  %1944 = vmatpush3.bf16.msra.mxu1 %v1972_v56  ;;  %vm322_vm0 = vcmask 261120  }
 0x108   :  { %1945 = vmatprep.subr.bf16.mxu1 %v2302_v1  ;;  %v446_v1 = vmul.f32 1.442695, %v443_v63  ;;  %v2018_v63 = vld [vmem:[#allocation2 + $0x94] ss:$8 sps:$4 sm:$0xff]  }
 0x10a   :  { %2162 = vpow2.f32 %v446_v1  ;;  %v2016_v1 = vld [vmem:[#allocation2 + $0x90] ss:$8 sps:$4 sm:$0xff]  }
 0x10b   :  { %1946 = vmatpush3.bf16.msra.mxu1 %v1973_v20  ;;  %v2009_v20 = vld [vmem:[#allocation2 + $0xc4] ss:$8 sps:$4 sm:$0xff]  }
 0x10c   :  { %666 = vmatprep.subr.bf16.mxu1 %v1976_v57  ;;  %v2007_v57 = vld [vmem:[#allocation2 + $0xc0] ss:$8 sps:$4 sm:$0xff]  }
 0x117   :  { %v2163_v10 = vpop.eup %2162 }
 0x118   :  { %v449_v11 = vadd.f32 2.0, %v2163_v10 }
 0x11a   :  { %v451_v12 = vmul.f32 %v2163_v10, %v449_v11  ;;  %v2024_v10 = vld [vmem:[%s2644_s10 + $0x70] sm:$0xff]  }
 0x11b   :  { %v2025_v11 = vld [vmem:[%s2644_s10 + $0x30] sm:$0xff]  }
 0x11c   :  { %v455_v13 = vadd.f32 2.0, %v451_v12  ;;  %v453_v18 = vmul.f32 %v451_v12, %v438_v62  ;;  %v2013_v62 = vld [vmem:[#allocation2 + $0xa0] ss:$8 sps:$4 sm:$0xff]  }
 0x11d   :  { %v2026_v12 = vld [vmem:[%s2644_s10 + $0x68] sm:$0xff]  }
 0x1c6   :  { %v283_v3 = vpop.f32.mrf.mxu1 }
 0x1c7   :  { %v284_v5 = vadd.f32 %v1743_v2, %v283_v3  ;;  %v2021_v3 = vld [vmem:[#allocation2 + $0x84] ss:$8 sps:$4 sm:$0xff]  }
 0x1c8   :  { %v1941_v6 = vpop.f32.mrf.mxu1 }
 0x1c9   :  { %v289_v4 = vmin.f32 %v284_v5, 20.0  ;;  %v2019_v6 = vld [vmem:[#allocation2 + $0x80] ss:$8 sps:$4 sm:$0xff]  }
 0x1ca   :  { %v286_v7 = vpop.f32.mrf.mxu1 }
 0x1cb   :  { %v290_v8 = vmul.f32 1.442695, %v289_v4 }
 0x1cc   :  { %v1942_v9 = vpop.f32.mrf.mxu1 }
 0x1cd   :  { %2164 = vpow2.f32 %v290_v8  ;;  %v2022_v8 = vld [vmem:[%s2644_s10 + $0x78] sm:$0xff]  }
 0x1ce   :  { %2166 = vrcp.f32 %v455_v13  ;;  %v2023_v9 = vld [vmem:[%s2644_s10 + $0x38] sm:$0xff]   ;;  %1893 = vmatprep.subr.bf16.mxu0 %v2022_v8  ;;  %v2027_v13 = vld [vmem:[%s2644_s10 + $0x28] sm:$0xff]  }
 0x1cf   :  { %1894 = vmatpush3.bf16.msra.mxu0 %v2023_v9 }
 0x1d0   :  { %1895 = vmatprep.subr.bf16.mxu0 %v2024_v10 }
 0x1d3   :  { %1896 = vmatpush3.bf16.msra.mxu0 %v2025_v11 }
 0x1d4   :  { %1897 = vmatprep.subr.bf16.mxu0 %v2026_v12 }
 0x1d7   :  { %1898 = vmatpush3.bf16.msra.mxu0 %v2027_v13 }
 0x1da   :  { %v2165_v14 = vpop.eup %2164 }
 0x1db   :  { %v292_v15 = vadd.f32 2.0, %v2165_v14  ;;  %v2167_v19 = vpop.eup %2166 }
 0x1dc   :  { %v459_v21 = vmul.f32 %v2167_v19, %v453_v18  ;;  %v2032_v18 = vld [vmem:[%s2644_s10 + $0x50] sm:$0xff]  }
 0x1dd   :  { %v293_v16 = vmul.f32 %v2165_v14, %v292_v15  ;;  %v2028_v14 = vld [vmem:[%s2644_s10 + $0x60] sm:$0xff]   ;;  %v2033_v19 = vld [vmem:[%s2644_s10 + $0x10] sm:$0xff]  }
 0x1de   :  { %v461_v28 = vpack.c.bf16 %v459_v21, %v459_v21  ;;  %v2029_v15 = vld [vmem:[%s2644_s10 + $0x20] sm:$0xff]   ;;  %1899 = vmatprep.subr.bf16.mxu0 %v2028_v14  ;;  %v2034_v21 = vld [vmem:[%s2644_s10 + $0x48] sm:$0xff]  }
 0x1df   :  { %v295_v17 = vadd.f32 2.0, %v293_v16  ;;  %v294_v22 = vmul.f32 %v293_v16, %v284_v5  ;;  %1900 = vmatpush3.bf16.msra.mxu0 %v2029_v15  ;;  %v2030_v16 = vld [vmem:[%s2644_s10 + $0x58] sm:$0xff]  }
 0x1e0   :  { %1901 = vmatprep.subr.bf16.mxu0 %v2030_v16  ;;  %v1746_v16 = vld [vmem:[%s2639_s5] ss:$0 sm:$0xff] }
 0x1e1   :  { %2168 = vrcp.f32 %v295_v17  ;;  %v2031_v17 = vld [vmem:[%s2644_s10 + $0x18] sm:$0xff]  }
 0x1e2   :  { %2170 = vpow2.f32 %v444_v39 }
 0x1e3   :  { %1902 = vmatpush3.bf16.msra.mxu0 %v2031_v17 }
 0x1e4   :  { %1903 = vmatprep.subr.bf16.mxu0 %v2032_v18 }
 0x1e7   :  { %1904 = vmatpush3.bf16.msra.mxu0 %v2033_v19 }
 0x1e8   :  { %1905 = vmatprep.subr.bf16.mxu0 %v2034_v21 }
 0x1ee   :  { %v2169_v24 = vpop.eup %2168 }
 0x1ef   :  { %v297_v26 = vmul.f32 %v2169_v24, %v294_v22  ;;  %v2171_v49 = vpop.eup %2170  ;;  %v2035_v22 = vld [vmem:[%s2644_s10 + $0x8] sm:$0xff]   ;;  %v2036_v24 = vld [vmem:[%s2644_s10 + $0x40] sm:$0xff]  }
 0x1f0   :  { %v448_v50 = vadd.f32 2.0, %v2171_v49  ;;  %1906 = vmatpush3.bf16.msra.mxu0 %v2035_v22  ;;  %v2044_v22 = vld [vmem:[#allocation5 + $0x70] ss:$8 sps:$4 sm:$0xff]  }
 0x1f1   :  { %v298_v29 = vpack.c.bf16 %v297_v26, %v297_v26  ;;  %v2037_v26 = vld [vmem:[%s2644_s10] sm:$0xff]   ;;  %1907 = vmatprep.subr.bf16.mxu0 %v2036_v24 }
 0x1f2   :  { %v450_v53 = vmul.f32 %v2171_v49, %v448_v50 }
 0x1f3   :  { %1948 = vmatmul.mubr.msk.bf16.vlgmr.msra.gmra.mxu1 %vm322_vm0, %v298_v29 }
 0x1f4   :  { %667 = vmatpush1.bf16.msra.mxu1 %v1974_v27  ;;  %698 = vmatprep.mubr.bf16.mxu1 %v461_v28  ;;  %v454_v56 = vadd.f32 2.0, %v450_v53  ;;  %v452_v2 = vmul.f32 %v450_v53, %v436_v33 }
 0x1f5   :  { %668 = vmatprep.subr.bf16.mxu1 %v1979_v31  ;;  %1908 = vmatpush3.bf16.msra.mxu0 %v2037_v26  ;;  %v494_v31 = vld [vmem:[%s2643_s9] sm:$0x3]  ;;  %v2049_v26 = vld [vmem:[#allocation5 + $0x64] ss:$8 sps:$4 sm:$0xff]  }
 0x1f6   :  { %2172 = vrcp.f32 %v454_v56  ;;  %v503_v33 = vrot.slane %v494_v31, %v2476_v59 }
 0x1f8   :  { %669 = vmatpush1.bf16.msra.mxu1 %v1977_v32  ;;  %v499_v32 = vrot.slane %v494_v31, %v2485_v23  ;;  %v2055_v31 = vld [vmem:[#allocation5 + $0x44] ss:$8 sps:$4 sm:$0xff]  }
 0x1f9   :  { %670 = vmatprep.subr.bf16.mxu1 %v1982_v34 }
 0x1fc   :  { %671 = vmatpush1.bf16.msra.mxu1 %v1980_v35 }
 0x1fd   :  { %672 = vmatprep.subr.bf16.mxu1 %v1985_v37 }
 0x200   :  { %673 = vmatpush1.bf16.msra.mxu1 %v1983_v38 }
 0x201   :  { %674 = vmatprep.subr.bf16.mxu1 %v1988_v40 }
 0x203   :  { %v2173_v5 = vpop.eup %2172 }
 0x204   :  { %675 = vmatpush1.bf16.msra.mxu1 %v1986_v41  ;;  %v458_v4 = vmul.f32 %v2173_v5, %v452_v2 }
 0x205   :  { %676 = vmatprep.subr.bf16.mxu1 %v1991_v42 }
 0x206   :  { %v460_v7 = vpack.c.bf16 %v458_v4, %v458_v4 }
 0x208   :  { %677 = vmatpush1.bf16.msra.mxu1 %v1989_v43 }
 0x209   :  { %678 = vmatprep.subr.bf16.mxu1 %v1994_v44 }
 0x20c   :  { %679 = vmatpush1.bf16.msra.mxu1 %v1992_v45 }
 0x20d   :  { %680 = vmatprep.subr.bf16.mxu1 %v1997_v46 }
 0x210   :  { %681 = vmatpush1.bf16.msra.mxu1 %v1995_v47 }
 0x211   :  { %682 = vmatprep.subr.bf16.mxu1 %v2000_v48 }
 0x214   :  { %683 = vmatpush2.bf16.msra.mxu1 %v1998_v25 }
 0x215   :  { %684 = vmatprep.subr.bf16.mxu1 %v2003_v51 }
 0x218   :  { %685 = vmatpush2.bf16.msra.mxu1 %v2001_v52 }
 0x219   :  { %686 = vmatprep.subr.bf16.mxu1 %v2006_v54 }
 0x21c   :  { %687 = vmatpush2.bf16.msra.mxu1 %v2004_v55 }
 0x21d   :  { %688 = vmatprep.subr.bf16.mxu1 %v2009_v20 }
 0x220   :  { %689 = vmatpush2.bf16.msra.mxu1 %v2007_v57 }
 0x221   :  { %690 = vmatprep.subr.bf16.mxu1 %v2012_v58  ;;  %v2040_v58 = vld [vmem:[%s2646_s12 + $0x14] ss:$8 sps:$4 sm:$0xff]  }
 0x222   :  { %966 = vmatprep.subr.bf16.mxu0 %v2040_v58  ;;  %v2100_v58 = vld [vmem:[#allocation7 + $0x54] ss:$8 sps:$4 sm:$0xff]  }
 0x224   :  { %691 = vmatpush2.bf16.msra.mxu1 %v2010_v60  ;;  %v2038_v60 = vld [vmem:[%s2646_s12 + $0x10] ss:$8 sps:$4 sm:$0xff]  }
 0x225   :  { %692 = vmatprep.subr.bf16.mxu1 %v2015_v61  ;;  %v2043_v61 = vld [vmem:[%s2646_s12 + $0x4] ss:$8 sps:$4 sm:$0xff]  }
 0x228   :  { %693 = vmatpush2.bf16.msra.mxu1 %v2013_v62  ;;  %v2041_v62 = vld [vmem:[%s2646_s12] ss:$8 sps:$4 sm:$0xff]  }
 0x229   :  { %694 = vmatprep.subr.bf16.mxu1 %v2018_v63 }
 0x22c   :  { %695 = vmatpush2.bf16.msra.mxu1 %v2016_v1  ;;  %v1785_v1 = vld [vmem:[%s2645_s11] ss:$0 sm:$0xff] }
 0x22d   :  { %696 = vmatprep.subr.bf16.mxu1 %v2021_v3 }
 0x230   :  { %697 = vmatpush2.bf16.msra.mxu1 %v2019_v6 }
 0x233   :  { %699 = vmatmul.mubr.bf16.vlgmr.msra.gmra.mxu1 %v460_v7 }
 0x2b3   :  { %v2537_v27 = vpop.f32.mrf.mxu1 }
 0x2b4   :  { %v361_v18 = vadd.f32 %v1746_v16, %v2537_v27  ;;  %v2058_v27 = vld [vmem:[#allocation5 + $0x34] ss:$8 sps:$4 sm:$0xff]  }
 0x2b5   :  { %v1949_v28 = vpop.f32.mrf.mxu1 }
 0x2b6   :  { %v2047_v28 = vld [vmem:[#allocation5 + $0x60] ss:$8 sps:$4 sm:$0xff]  }
 0x2b7   :  { %v363_v29 = vpop.f32.mrf.mxu1 }
 0x2b8   :  { %v2052_v29 = vld [vmem:[#allocation5 + $0x54] ss:$8 sps:$4 sm:$0xff]  }
 0x2b9   :  { %v1950_v30 = vpop.f32.mrf.mxu1 }
 0x2ba   :  { %v2050_v30 = vld [vmem:[#allocation5 + $0x50] ss:$8 sps:$4 sm:$0xff]  }
 0x2f3   :  { %v700_v34 = vpop.f32.mrf.mxu1 }
 0x2f4   :  { %v701_v35 = vadd.f32 %v700_v34, %v499_v32  ;;  %v2053_v32 = vld [vmem:[#allocation5 + $0x40] ss:$8 sps:$4 sm:$0xff]   ;;  %v2061_v34 = vld [vmem:[#allocation5 + $0x24] ss:$8 sps:$4 sm:$0xff]  }
 0x2f5   :  { %v702_v36 = vpop.f32.mrf.mxu1 }
 0x2f6   :  { %v707_v37 = vmin.f32 %v701_v35, 20.0  ;;  %v703_v38 = vadd.f32 %v702_v36, %v503_v33  ;;  %v2056_v33 = vld [vmem:[#allocation5 + $0x30] ss:$8 sps:$4 sm:$0xff]   ;;  %v2064_v36 = vld [vmem:[#allocation5 + $0x14] ss:$8 sps:$4 sm:$0xff]  }
 0x2f7   :  { %v704_v39 = vpop.f32.mrf.mxu1 }
 0x2f8   :  { %v709_v40 = vmul.f32 1.442695, %v707_v37  ;;  %v708_v41 = vmin.f32 %v703_v38, 20.0  ;;  %v2062_v37 = vld [vmem:[#allocation5 + $0x10] ss:$8 sps:$4 sm:$0xff]  }
 0x2f9   :  { %v705_v42 = vpop.f32.mrf.mxu1  ;;  %v2065_v39 = vld [vmem:[#allocation5] ss:$8 sps:$4 sm:$0xff]  }
 0x2fa   :  { %2174 = vpow2.f32 %v709_v40  ;;  %v711_v43 = vmul.f32 1.442695, %v708_v41  ;;  %v2070_v40 = vld [vmem:[#allocation5 + $0xf4] ss:$8 sps:$4 sm:$0xff]   ;;  %v2068_v41 = vld [vmem:[#allocation5 + $0xf0] ss:$8 sps:$4 sm:$0xff]  }
 0x2fb   :  { %v2073_v42 = vld [vmem:[#allocation5 + $0xe4] ss:$8 sps:$4 sm:$0xff]  }
 0x2fc   :  { %2176 = vpow2.f32 %v711_v43  ;;  %v2071_v43 = vld [vmem:[#allocation5 + $0xe0] ss:$8 sps:$4 sm:$0xff]  }
 0x307   :  { %v2175_v44 = vpop.eup %2174 }
 0x308   :  { %v713_v45 = vadd.f32 2.0, %v2175_v44 }
 0x309   :  { %v2177_v46 = vpop.eup %2176 }
 0x30a   :  { %v715_v47 = vmul.f32 %v2175_v44, %v713_v45  ;;  %v714_v48 = vadd.f32 2.0, %v2177_v46  ;;  %v2076_v44 = vld [vmem:[#allocation5 + $0xd4] ss:$8 sps:$4 sm:$0xff]   ;;  %v2074_v45 = vld [vmem:[#allocation5 + $0xd0] ss:$8 sps:$4 sm:$0xff]  }
 0x30c   :  { %v719_v49 = vadd.f32 2.0, %v715_v47  ;;  %v716_v25 = vmul.f32 %v2177_v46, %v714_v48  ;;  %v717_v52 = vmul.f32 %v715_v47, %v701_v35  ;;  %v2059_v35 = vld [vmem:[#allocation5 + $0x20] ss:$8 sps:$4 sm:$0xff]   ;;  %v2079_v46 = vld [vmem:[#allocation5 + $0xc4] ss:$8 sps:$4 sm:$0xff]  }
 0x30d   :  { %v2077_v47 = vld [vmem:[#allocation5 + $0xc0] ss:$8 sps:$4 sm:$0xff]   ;;  %v2082_v48 = vld [vmem:[#allocation5 + $0xb4] ss:$8 sps:$4 sm:$0xff]  }
 0x30e   :  { %2178 = vrcp.f32 %v719_v49  ;;  %v720_v50 = vadd.f32 2.0, %v716_v25  ;;  %v718_v53 = vmul.f32 %v716_v25, %v703_v38  ;;  %v2067_v38 = vld [vmem:[#allocation5 + $0x4] ss:$8 sps:$4 sm:$0xff]   ;;  %v2080_v49 = vld [vmem:[#allocation5 + $0xb0] ss:$8 sps:$4 sm:$0xff]  }
 0x30f   :  { %v2085_v25 = vld [vmem:[#allocation5 + $0xa4] ss:$8 sps:$4 sm:$0xff]  }
 0x310   :  { %2180 = vrcp.f32 %v720_v50  ;;  %v2083_v50 = vld [vmem:[#allocation5 + $0xa0] ss:$8 sps:$4 sm:$0xff]  }
 0x31b   :  { %v2179_v51 = vpop.eup %2178 }
 0x31c   :  { %v723_v55 = vmul.f32 %v2179_v51, %v717_v52  ;;  %v2088_v51 = vld [vmem:[#allocation5 + $0x94] ss:$8 sps:$4 sm:$0xff]   ;;  %v2086_v52 = vld [vmem:[#allocation5 + $0x90] ss:$8 sps:$4 sm:$0xff]  }
 0x31d   :  { %v2181_v54 = vpop.eup %2180 }
 0x31e   :  { %v724_v56 = vmul.f32 %v2181_v54, %v718_v53  ;;  %v725_v57 = vpack.c.bf16 %v723_v55, %v723_v55  ;;  %v2091_v53 = vld [vmem:[#allocation5 + $0x84] ss:$8 sps:$4 sm:$0xff]   ;;  %v2089_v54 = vld [vmem:[#allocation5 + $0x80] ss:$8 sps:$4 sm:$0xff]   ;;  %v2092_v55 = vld [vmem:[#allocation7 + $0x70] ss:$8 sps:$4 sm:$0xff]  }
 0x320   :  { %v726_v20 = vpack.c.bf16 %v724_v56, %v724_v56  ;;  %v2094_v56 = vld [vmem:[#allocation7 + $0x74] ss:$8 sps:$4 sm:$0xff]  }
 0x321   :  { %1484 = vmatprep.subr.bf16.mxu1 %v2094_v56 }
 0x322   :  { %894 = vmatprep.mubr.bf16.mxu0 %v726_v20  ;;  %v2097_v20 = vld [vmem:[#allocation7 + $0x64] ss:$8 sps:$4 sm:$0xff]   ;;  %1485 = vmatpush1.bf16.msra.mxu1 %v2092_v55 }
 0x323   :  { %895 = vmatmul.mubr.bf16.vlgmr.msra.gmra.mxu0 %v725_v57  ;;  %v2095_v57 = vld [vmem:[#allocation7 + $0x60] ss:$8 sps:$4 sm:$0xff]   ;;  %1486 = vmatprep.subr.bf16.mxu1 %v2097_v20 }
 0x324   :  { %986 = vmatprep.mubr.bf16.mxu0 %v2301_v0  ;;  %967 = vmatpush1.bf16.msra.mxu0 %v2038_v60  ;;  %v2046_v0 = vld [vmem:[#allocation5 + $0x74] ss:$8 sps:$4 sm:$0xff]   ;;  %v2098_v60 = vld [vmem:[#allocation7 + $0x50] ss:$8 sps:$4 sm:$0xff]  }
 0x325   :  { %968 = vmatprep.subr.bf16.mxu0 %v2043_v61  ;;  %v2103_v61 = vld [vmem:[#allocation7 + $0x44] ss:$8 sps:$4 sm:$0xff]  }
 0x326   :  { %1487 = vmatpush1.bf16.msra.mxu1 %v2095_v57 }
 0x327   :  { %1488 = vmatprep.subr.bf16.mxu1 %v2100_v58 }
 0x328   :  { %969 = vmatpush1.bf16.msra.mxu0 %v2041_v62  ;;  %v2101_v62 = vld [vmem:[#allocation7 + $0x40] ss:$8 sps:$4 sm:$0xff]  }
 0x329   :  { %1219 = vmatprep.subr.bf16.mxu0 %v2046_v0  ;;  %v919_v0 = vld [vmem:[%s2647_s13] sm:$0x3] }
 0x32a   :  { %1489 = vmatpush1.bf16.msra.mxu1 %v2098_v60 }
 0x32b   :  { %1490 = vmatprep.subr.bf16.mxu1 %v2103_v61 }
 0x32e   :  { %1491 = vmatpush1.bf16.msra.mxu1 %v2101_v62 }
 0x3e3   :  { %v1909_v63 = vpop.f32.mrf.mxu0 }
 0x3e5   :  { %v1910_v2 = vpop.f32.mrf.mxu0 }
 0x3e6   :  { %v1911_v3 = vadd.f32 %v1910_v2, %v1909_v63  ;;  %v924_v63 = vrot.slane %v919_v0, %v2485_v23 }
 0x3e7   :  { %v1912_v5 = vpop.f32.mrf.mxu0 }
 0x3e8   :  { %v897_v6 = vadd.f32 %v1911_v3, %v1785_v1  ;;  %v928_v1 = vrot.slane %v919_v0, %v2476_v59 }
 0x3e9   :  { %v1913_v4 = vpop.f32.mrf.mxu0 }
 0x3ea   :  { %v902_v7 = vmin.f32 %v897_v6, 20.0 }
 0x3ec   :  { %v903_v8 = vmul.f32 1.442695, %v902_v7 }
 0x3ee   :  { %2182 = vpow2.f32 %v903_v8 }
 0x3fb   :  { %v2183_v9 = vpop.eup %2182 }
 0x3fc   :  { %v905_v10 = vadd.f32 2.0, %v2183_v9 }
 0x3fe   :  { %v906_v11 = vmul.f32 %v2183_v9, %v905_v10 }
 0x400   :  { %v908_v12 = vadd.f32 2.0, %v906_v11  ;;  %v907_v13 = vmul.f32 %v906_v11, %v897_v6 }
 0x402   :  { %2184 = vrcp.f32 %v908_v12 }
 0x40f   :  { %v2185_v14 = vpop.eup %2184 }
 0x410   :  { %v910_v15 = vmul.f32 %v2185_v14, %v907_v13 }
 0x412   :  { %v911_v17 = vpack.c.bf16 %v910_v15, %v910_v15 }
 0x414   :  { %v912_v19 = vunpack.c.l.bf16 %v911_v17 }
 0x416   :  { %v913_v21 = vadd.f32 %v912_v19, %v361_v18 }
 0x418   :  { %v918_v24 = vpack.c.bf16 %v913_v21, %v913_v21 }
 0x41a   :  { %1806 = vmatmul.mubr.msk.bf16.vlgmr.msra.gmra.mxu0 %vm322_vm0, %v918_v24 }
 0x41b   :  { %1220 = vmatpush1.bf16.msra.mxu0 %v2044_v22 }
 0x41c   :  { %1221 = vmatprep.subr.bf16.mxu0 %v2049_v26 }
 0x41f   :  { %1222 = vmatpush1.bf16.msra.mxu0 %v2047_v28 }
 0x420   :  { %1223 = vmatprep.subr.bf16.mxu0 %v2052_v29 }
 0x423   :  { %1224 = vmatpush1.bf16.msra.mxu0 %v2050_v30 }
 0x424   :  { %1225 = vmatprep.subr.bf16.mxu0 %v2055_v31 }
 0x427   :  { %1226 = vmatpush1.bf16.msra.mxu0 %v2053_v32  ;;  %v2106_v32 = vld [vmem:[#allocation7 + $0x34] ss:$8 sps:$4 sm:$0xff]  }
 0x428   :  { %1227 = vmatprep.subr.bf16.mxu0 %v2058_v27  ;;  %v2104_v27 = vld [vmem:[#allocation7 + $0x30] ss:$8 sps:$4 sm:$0xff]   ;;  %1492 = vmatprep.subr.bf16.mxu1 %v2106_v32 }
 0x429   :  { %1493 = vmatpush1.bf16.msra.mxu1 %v2104_v27  ;;  %v2149_v32 = vld [vmem:[%s2652_s18 + $0x18] sm:$0xff]   ;;  %v2150_v27 = vld [vmem:[%s2652_s18 + $0x50] sm:$0xff]  }
 0x42b   :  { %1228 = vmatpush1.bf16.msra.mxu0 %v2056_v33  ;;  %v2109_v33 = vld [vmem:[#allocation7 + $0x24] ss:$8 sps:$4 sm:$0xff]  }
 0x42c   :  { %1229 = vmatprep.subr.bf16.mxu0 %v2061_v34  ;;  %v2107_v34 = vld [vmem:[#allocation7 + $0x20] ss:$8 sps:$4 sm:$0xff]   ;;  %1494 = vmatprep.subr.bf16.mxu1 %v2109_v33  ;;  %v2151_v33 = vld [vmem:[%s2652_s18 + $0x10] sm:$0xff]  }
 0x42d   :  { %1495 = vmatpush1.bf16.msra.mxu1 %v2107_v34  ;;  %v2152_v34 = vld [vmem:[%s2652_s18 + $0x48] sm:$0xff]  }
 0x42f   :  { %1230 = vmatpush1.bf16.msra.mxu0 %v2059_v35  ;;  %v2112_v35 = vld [vmem:[#allocation7 + $0x14] ss:$8 sps:$4 sm:$0xff]  }
 0x430   :  { %1231 = vmatprep.subr.bf16.mxu0 %v2064_v36  ;;  %v2110_v36 = vld [vmem:[#allocation7 + $0x10] ss:$8 sps:$4 sm:$0xff]   ;;  %1496 = vmatprep.subr.bf16.mxu1 %v2112_v35  ;;  %v2153_v35 = vld [vmem:[%s2652_s18 + $0x8] sm:$0xff]  }
 0x431   :  { %1497 = vmatpush1.bf16.msra.mxu1 %v2110_v36  ;;  %v2154_v36 = vld [vmem:[%s2652_s18 + $0x40] sm:$0xff]  }
 0x433   :  { %1232 = vmatpush1.bf16.msra.mxu0 %v2062_v37  ;;  %v2115_v37 = vld [vmem:[#allocation7 + $0x4] ss:$8 sps:$4 sm:$0xff]  }
 0x434   :  { %1233 = vmatprep.subr.bf16.mxu0 %v2067_v38  ;;  %v2113_v38 = vld [vmem:[#allocation7] ss:$8 sps:$4 sm:$0xff]   ;;  %1498 = vmatprep.subr.bf16.mxu1 %v2115_v37 }
 0x435   :  { %1499 = vmatpush1.bf16.msra.mxu1 %v2113_v38  ;;  %v2155_v37 = vld [vmem:[%s2652_s18] sm:$0xff]  }
 0x436   :  { %v1312_v38 = vld [vmem:[%s2651_s17] sm:$0x3] }
 0x437   :  { %1234 = vmatpush1.bf16.msra.mxu0 %v2065_v39  ;;  %v2118_v39 = vld [vmem:[#allocation7 + $0xf4] ss:$8 sps:$4 sm:$0xff]  }
 0x438   :  { %1235 = vmatprep.subr.bf16.mxu0 %v2070_v40  ;;  %v2116_v40 = vld [vmem:[#allocation7 + $0xf0] ss:$8 sps:$4 sm:$0xff]   ;;  %1500 = vmatprep.subr.bf16.mxu1 %v2118_v39  ;;  %v1317_v39 = vrot.slane %v1312_v38, %v2485_v23 }
 0x439   :  { %1501 = vmatpush2.bf16.msra.mxu1 %v2116_v40  ;;  %v1321_v40 = vrot.slane %v1312_v38, %v2476_v59 }
 0x43b   :  { %1236 = vmatpush2.bf16.msra.mxu0 %v2068_v41  ;;  %v2121_v41 = vld [vmem:[#allocation7 + $0xe4] ss:$8 sps:$4 sm:$0xff]  }
 0x43c   :  { %1237 = vmatprep.subr.bf16.mxu0 %v2073_v42  ;;  %v2119_v42 = vld [vmem:[#allocation7 + $0xe0] ss:$8 sps:$4 sm:$0xff]   ;;  %1502 = vmatprep.subr.bf16.mxu1 %v2121_v41 }
 0x43d   :  { %1503 = vmatpush2.bf16.msra.mxu1 %v2119_v42 }
 0x43f   :  { %1238 = vmatpush2.bf16.msra.mxu0 %v2071_v43  ;;  %v2124_v43 = vld [vmem:[#allocation7 + $0xd4] ss:$8 sps:$4 sm:$0xff]  }
 0x440   :  { %1239 = vmatprep.subr.bf16.mxu0 %v2076_v44  ;;  %v2122_v44 = vld [vmem:[#allocation7 + $0xd0] ss:$8 sps:$4 sm:$0xff]   ;;  %1504 = vmatprep.subr.bf16.mxu1 %v2124_v43 }
 0x441   :  { %1505 = vmatpush2.bf16.msra.mxu1 %v2122_v44 }
 0x443   :  { %1240 = vmatpush2.bf16.msra.mxu0 %v2074_v45  ;;  %v2127_v45 = vld [vmem:[#allocation7 + $0xc4] ss:$8 sps:$4 sm:$0xff]  }
 0x444   :  { %1241 = vmatprep.subr.bf16.mxu0 %v2079_v46  ;;  %v2125_v46 = vld [vmem:[#allocation7 + $0xc0] ss:$8 sps:$4 sm:$0xff]   ;;  %1506 = vmatprep.subr.bf16.mxu1 %v2127_v45 }
 0x445   :  { %1507 = vmatpush2.bf16.msra.mxu1 %v2125_v46 }
 0x447   :  { %1242 = vmatpush2.bf16.msra.mxu0 %v2077_v47  ;;  %v2130_v47 = vld [vmem:[#allocation7 + $0xb4] ss:$8 sps:$4 sm:$0xff]  }
 0x448   :  { %1243 = vmatprep.subr.bf16.mxu0 %v2082_v48  ;;  %v2128_v48 = vld [vmem:[#allocation7 + $0xb0] ss:$8 sps:$4 sm:$0xff]   ;;  %1508 = vmatprep.subr.bf16.mxu1 %v2130_v47 }
 0x449   :  { %1509 = vmatpush2.bf16.msra.mxu1 %v2128_v48 }
 0x44b   :  { %1244 = vmatpush2.bf16.msra.mxu0 %v2080_v49  ;;  %v2133_v49 = vld [vmem:[#allocation7 + $0xa4] ss:$8 sps:$4 sm:$0xff]  }
 0x44c   :  { %1245 = vmatprep.subr.bf16.mxu0 %v2085_v25  ;;  %v2131_v25 = vld [vmem:[#allocation7 + $0xa0] ss:$8 sps:$4 sm:$0xff]   ;;  %1510 = vmatprep.subr.bf16.mxu1 %v2133_v49 }
 0x44d   :  { %1511 = vmatpush2.bf16.msra.mxu1 %v2131_v25 }
 0x44f   :  { %1246 = vmatpush2.bf16.msra.mxu0 %v2083_v50  ;;  %v2136_v50 = vld [vmem:[#allocation7 + $0x94] ss:$8 sps:$4 sm:$0xff]  }
 0x450   :  { %1247 = vmatprep.subr.bf16.mxu0 %v2088_v51  ;;  %v2134_v51 = vld [vmem:[#allocation7 + $0x90] ss:$8 sps:$4 sm:$0xff]   ;;  %1512 = vmatprep.subr.bf16.mxu1 %v2136_v50 }
 0x451   :  { %1513 = vmatpush2.bf16.msra.mxu1 %v2134_v51 }
 0x453   :  { %1248 = vmatpush2.bf16.msra.mxu0 %v2086_v52  ;;  %v2139_v52 = vld [vmem:[#allocation7 + $0x84] ss:$8 sps:$4 sm:$0xff]  }
 0x454   :  { %1249 = vmatprep.subr.bf16.mxu0 %v2091_v53  ;;  %v2137_v53 = vld [vmem:[#allocation7 + $0x80] ss:$8 sps:$4 sm:$0xff]   ;;  %1514 = vmatprep.subr.bf16.mxu1 %v2139_v52 }
 0x455   :  { %1515 = vmatpush2.bf16.msra.mxu1 %v2137_v53 }
 0x457   :  { %1250 = vmatpush2.bf16.msra.mxu0 %v2089_v54  ;;  %v1047_v54 = vld [vmem:[%s2649_s15] sm:$0x3] }
 0x458   :  { %v1052_v55 = vrot.slane %v1047_v54, %v2485_v23  ;;  %v1056_v56 = vrot.slane %v1047_v54, %v2476_v59 }
 0x4da   :  { %v988_v2 = vpop.f32.mrf.mxu0 }
 0x4db   :  { %v989_v3 = vadd.f32 %v988_v2, %v924_v63 }
 0x4dc   :  { %v990_v5 = vpop.f32.mrf.mxu0 }
 0x4dd   :  { %v995_v6 = vmin.f32 %v989_v3, 20.0  ;;  %v991_v4 = vadd.f32 %v990_v5, %v928_v1 }
 0x4de   :  { %v992_v7 = vpop.f32.mrf.mxu0 }
 0x4df   :  { %v997_v8 = vmul.f32 1.442695, %v995_v6  ;;  %v996_v9 = vmin.f32 %v991_v4, 20.0 }
 0x4e0   :  { %v993_v10 = vpop.f32.mrf.mxu0 }
 0x4e1   :  { %2186 = vpow2.f32 %v997_v8  ;;  %v999_v11 = vmul.f32 1.442695, %v996_v9 }
 0x4e3   :  { %2188 = vpow2.f32 %v999_v11 }
 0x4ee   :  { %v2187_v12 = vpop.eup %2186 }
 0x4ef   :  { %v1001_v13 = vadd.f32 2.0, %v2187_v12 }
 0x4f0   :  { %v2189_v14 = vpop.eup %2188 }
 0x4f1   :  { %v1003_v15 = vmul.f32 %v2187_v12, %v1001_v13  ;;  %v1002_v16 = vadd.f32 2.0, %v2189_v14 }
 0x4f3   :  { %v1007_v17 = vadd.f32 2.0, %v1003_v15  ;;  %v1004_v18 = vmul.f32 %v2189_v14, %v1002_v16  ;;  %v1005_v22 = vmul.f32 %v1003_v15, %v989_v3 }
 0x4f5   :  { %2190 = vrcp.f32 %v1007_v17  ;;  %v1008_v19 = vadd.f32 2.0, %v1004_v18  ;;  %v1006_v24 = vmul.f32 %v1004_v18, %v991_v4 }
 0x4f7   :  { %2192 = vrcp.f32 %v1008_v19  ;;  %v2140_v19 = vld [vmem:[%s2652_s18 + $0x78] sm:$0xff]  }
 0x4f8   :  { %1915 = vmatprep.subr.bf16.mxu0 %v2140_v19 }
 0x502   :  { %v2191_v21 = vpop.eup %2190 }
 0x503   :  { %v1011_v28 = vmul.f32 %v2191_v21, %v1005_v22  ;;  %v2141_v21 = vld [vmem:[%s2652_s18 + $0x38] sm:$0xff]   ;;  %v2142_v22 = vld [vmem:[%s2652_s18 + $0x70] sm:$0xff]  }
 0x504   :  { %v2193_v26 = vpop.eup %2192 }
 0x505   :  { %v1012_v29 = vmul.f32 %v2193_v26, %v1006_v24  ;;  %v1013_v31 = vpack.c.bf16 %v1011_v28, %v1011_v28  ;;  %v2143_v24 = vld [vmem:[%s2652_s18 + $0x30] sm:$0xff]   ;;  %v2144_v26 = vld [vmem:[%s2652_s18 + $0x68] sm:$0xff]  }
 0x506   :  { %v2145_v28 = vld [vmem:[%s2652_s18 + $0x28] sm:$0xff]  }
 0x507   :  { %v1014_v30 = vpack.c.bf16 %v1012_v29, %v1012_v29  ;;  %v2146_v29 = vld [vmem:[%s2652_s18 + $0x60] sm:$0xff]  }
 0x509   :  { %1251 = vmatprep.mubr.bf16.mxu0 %v1014_v30  ;;  %v2147_v30 = vld [vmem:[%s2652_s18 + $0x20] sm:$0xff]  }
 0x50a   :  { %1252 = vmatmul.mubr.bf16.vlgmr.msra.gmra.mxu0 %v1013_v31  ;;  %v2148_v31 = vld [vmem:[%s2652_s18 + $0x58] sm:$0xff]  }
 0x50b   :  { %1916 = vmatpush3.bf16.msra.mxu0 %v2141_v21 }
 0x50c   :  { %1917 = vmatprep.subr.bf16.mxu0 %v2142_v22 }
 0x50f   :  { %1918 = vmatpush3.bf16.msra.mxu0 %v2143_v24 }
 0x510   :  { %1919 = vmatprep.subr.bf16.mxu0 %v2144_v26 }
 0x513   :  { %1920 = vmatpush3.bf16.msra.mxu0 %v2145_v28 }
 0x514   :  { %1921 = vmatprep.subr.bf16.mxu0 %v2146_v29 }
 0x517   :  { %1922 = vmatpush3.bf16.msra.mxu0 %v2147_v30 }
 0x518   :  { %1923 = vmatprep.subr.bf16.mxu0 %v2148_v31 }
 0x51b   :  { %1924 = vmatpush3.bf16.msra.mxu0 %v2149_v32 }
 0x51c   :  { %1925 = vmatprep.subr.bf16.mxu0 %v2150_v27 }
 0x51f   :  { %1926 = vmatpush3.bf16.msra.mxu0 %v2151_v33 }
 0x520   :  { %1927 = vmatprep.subr.bf16.mxu0 %v2152_v34 }
 0x523   :  { %1928 = vmatpush3.bf16.msra.mxu0 %v2153_v35 }
 0x524   :  { %1929 = vmatprep.subr.bf16.mxu0 %v2154_v36 }
 0x527   :  { %1930 = vmatpush3.bf16.msra.mxu0 %v2155_v37 }
 0x5ca   :  { %v1253_v20 = vpop.f32.mrf.mxu0 }
 0x5cb   :  { %v1254_v57 = vadd.f32 %v1253_v20, %v1052_v55 }
 0x5cc   :  { %v1255_v58 = vpop.f32.mrf.mxu0 }
 0x5cd   :  { %v1260_v60 = vmin.f32 %v1254_v57, 20.0  ;;  %v1256_v61 = vadd.f32 %v1255_v58, %v1056_v56 }
 0x5ce   :  { %v1257_v62 = vpop.f32.mrf.mxu0 }
 0x5cf   :  { %v1262_v0 = vmul.f32 1.442695, %v1260_v60  ;;  %v1261_v63 = vmin.f32 %v1256_v61, 20.0 }
 0x5d0   :  { %v1258_v1 = vpop.f32.mrf.mxu0 }
 0x5d1   :  { %2194 = vpow2.f32 %v1262_v0  ;;  %v1264_v2 = vmul.f32 1.442695, %v1261_v63  ;;  %v1871_v1 = vld [vmem:[%s2653_s19] ss:$0 sm:$0xff] }
 0x5d3   :  { %2196 = vpow2.f32 %v1264_v2 }
 0x5de   :  { %v2195_v3 = vpop.eup %2194 }
 0x5df   :  { %v1266_v5 = vadd.f32 2.0, %v2195_v3 }
 0x5e0   :  { %v2197_v6 = vpop.eup %2196 }
 0x5e1   :  { %v1268_v4 = vmul.f32 %v2195_v3, %v1266_v5  ;;  %v1267_v7 = vadd.f32 2.0, %v2197_v6 }
 0x5e3   :  { %v1272_v8 = vadd.f32 2.0, %v1268_v4  ;;  %v1269_v9 = vmul.f32 %v2197_v6, %v1267_v7  ;;  %v1270_v12 = vmul.f32 %v1268_v4, %v1254_v57 }
 0x5e5   :  { %2198 = vrcp.f32 %v1272_v8  ;;  %v1273_v10 = vadd.f32 2.0, %v1269_v9  ;;  %v1271_v13 = vmul.f32 %v1269_v9, %v1256_v61 }
 0x5e7   :  { %2200 = vrcp.f32 %v1273_v10 }
 0x5f2   :  { %v2199_v11 = vpop.eup %2198 }
 0x5f3   :  { %v1276_v15 = vmul.f32 %v2199_v11, %v1270_v12 }
 0x5f4   :  { %v2201_v14 = vpop.eup %2200 }
 0x5f5   :  { %v1277_v16 = vmul.f32 %v2201_v14, %v1271_v13  ;;  %v1278_v18 = vpack.c.bf16 %v1276_v15, %v1276_v15 }
 0x5f7   :  { %v1279_v17 = vpack.c.bf16 %v1277_v16, %v1277_v16 }
 0x5f9   :  { %1516 = vmatprep.mubr.bf16.mxu1 %v1279_v17 }
 0x5fa   :  { %1517 = vmatmul.mubr.bf16.vlgmr.msra.gmra.mxu1 %v1278_v18 }
 0x6ba   :  { %v1518_v41 = vpop.f32.mrf.mxu1 }
 0x6bb   :  { %v1519_v42 = vadd.f32 %v1518_v41, %v1317_v39 }
 0x6bc   :  { %v1520_v43 = vpop.f32.mrf.mxu1 }
 0x6bd   :  { %v1525_v44 = vmin.f32 %v1519_v42, 20.0  ;;  %v1521_v45 = vadd.f32 %v1520_v43, %v1321_v40 }
 0x6be   :  { %v1522_v46 = vpop.f32.mrf.mxu1 }
 0x6bf   :  { %v1527_v47 = vmul.f32 1.442695, %v1525_v44  ;;  %v1526_v48 = vmin.f32 %v1521_v45, 20.0 }
 0x6c0   :  { %v1523_v49 = vpop.f32.mrf.mxu1 }
 0x6c1   :  { %2202 = vpow2.f32 %v1527_v47  ;;  %v1529_v25 = vmul.f32 1.442695, %v1526_v48 }
 0x6c3   :  { %2204 = vpow2.f32 %v1529_v25 }
 0x6ce   :  { %v2203_v50 = vpop.eup %2202 }
 0x6cf   :  { %v1531_v51 = vadd.f32 2.0, %v2203_v50 }
 0x6d0   :  { %v2205_v52 = vpop.eup %2204 }
 0x6d1   :  { %v1533_v53 = vmul.f32 %v2203_v50, %v1531_v51  ;;  %v1532_v54 = vadd.f32 2.0, %v2205_v52 }
 0x6d3   :  { %v1537_v23 = vadd.f32 2.0, %v1533_v53  ;;  %v1534_v55 = vmul.f32 %v2205_v52, %v1532_v54  ;;  %v1535_v20 = vmul.f32 %v1533_v53, %v1519_v42 }
 0x6d5   :  { %2206 = vrcp.f32 %v1537_v23  ;;  %v1538_v59 = vadd.f32 2.0, %v1534_v55  ;;  %v1536_v57 = vmul.f32 %v1534_v55, %v1521_v45 }
 0x6d7   :  { %2208 = vrcp.f32 %v1538_v59 }
 0x6e2   :  { %v2207_v56 = vpop.eup %2206 }
 0x6e3   :  { %v1541_v60 = vmul.f32 %v2207_v56, %v1535_v20 }
 0x6e4   :  { %v2209_v58 = vpop.eup %2208 }
 0x6e5   :  { %v1542_v61 = vmul.f32 %v2209_v58, %v1536_v57  ;;  %v1543_v0 = vpack.c.bf16 %v1541_v60, %v1541_v60 }
 0x6e7   :  { %v1544_v62 = vpack.c.bf16 %v1542_v61, %v1542_v61 }
 0x6e9   :  { %1712 = vmatprep.mubr.bf16.mxu0 %v1544_v62 }
 0x6ea   :  { %1713 = vmatmul.mubr.bf16.vlgmr.msra.gmra.mxu0 %v1543_v0 }
 0x7aa   :  { %v1931_v63 = vpop.f32.mrf.mxu0 }
 0x7ac   :  { %v1932_v2 = vpop.f32.mrf.mxu0 }
 0x7ad   :  { %v1933_v3 = vadd.f32 %v1932_v2, %v1931_v63 }
 0x7ae   :  { %v1934_v5 = vpop.f32.mrf.mxu0 }
 0x7af   :  { %v1715_v6 = vadd.f32 %v1933_v3, %v1871_v1 }
 0x7b0   :  { %v1935_v4 = vpop.f32.mrf.mxu0 }
 0x7b1   :  { %v1720_v7 = vpack.c.bf16 %v1715_v6, %v1715_v6 }
 0x7b3   :  { %1721 = vst [vmem:[#allocation8] sm:$0xf] %v1720_v7 }
 0x7b4   :  { %2281 = shalt.err (!%p2278_p5)
}
 0x7b5   :  { %1731 = dma.vmem_to_hbm [thread:$0]  %s1729_s4, 64, %s2654_s20, [#allocation4]  }
 0x7b6   :  { %2294 = dma.done.wait [#allocation4], 64  }
 0x7b7   :  { %2295 = vsyncadd [#allocation4], 4294967232 }
 0x7b8   :  { %1735 = vsyncpa [#allocation3], 1 }
 0x7b9   :  { %1736 = vsyncpa [#allocation6], 1 }
 0x7ba   :  { %1737 = vsyncpa [#allocation4], 1 }

</bundles_post_ra>
